<compile_context>
chip_gen: v5e
topology: v5e:2x2
jax: 0.10.0
libtpu: 0.0.40
codegen_flags: <defaults>
</compile_context>

<pallas_src>
import jax
import jax.numpy as jnp
from jax.experimental import pallas as pl
from jax.experimental.pallas import tpu as pltpu

# ---------------- config (small, consistent with BertModel shapes) ----------------
VOCAB = 100
TYPE_VOCAB = 2
MAX_POS = 16
HIDDEN = 32
NUM_HEADS = 2
HEAD_DIM = HIDDEN // NUM_HEADS
INTER = 64
NUM_LAYERS = 2
NUM_CLASSES = 3
LN_EPS = 1e-12
LANES = 128

# ---------------- slab layout constants ----------------
# bf16 weight slab: each weight stored (in, out), zero-padded to 128 lanes.
R_QKV = 0                              # (HIDDEN rows, 3*HIDDEN lanes) [Wq|Wk|Wv]
R_WO = HIDDEN                          # (HIDDEN rows, HIDDEN lanes)
R_WI = 2 * HIDDEN                      # (HIDDEN rows, INTER lanes)
R_WO2 = 3 * HIDDEN                     # (INTER rows, HIDDEN lanes)
LAYER_W_ROWS = 3 * HIDDEN + INTER      # 160
R_WP = NUM_LAYERS * LAYER_W_ROWS       # 320
R_WC = R_WP + HIDDEN                   # 352
W_ROWS = R_WC + HIDDEN                 # 384  (multiple of 16 -> bf16 tile aligned)

# f32 bias / LayerNorm slab: one (1, n) vector per row, zero-padded to 128 lanes.
F_BQKV, F_BO, F_G1, F_B1, F_BI, F_BO2, F_G2, F_B2 = range(8)
LAYER_F_ROWS = 8
F_EMB_G = NUM_LAYERS * LAYER_F_ROWS    # 16
F_EMB_B = F_EMB_G + 1
F_BP = F_EMB_G + 2
F_BC = F_EMB_G + 3
F_ROWS = ((F_EMB_G + 4 + 7) // 8) * 8  # 24

# aux slab rows (per-call dynamic data)
AUX_KEYADD_ROW = 0                     # (1-attention_mask)*-10000 per flattened token
AUX_BID_ROW = 1                        # batch id per flattened token (as f32)


# ---------------- in-kernel helpers ----------------
def _ln(x, gamma, beta):
    mu = jnp.mean(x, axis=-1, keepdims=True)
    var = jnp.mean((x - mu) ** 2, axis=-1, keepdims=True)
    return (x - mu) * jax.lax.rsqrt(var + LN_EPS) * gamma + beta


def _gelu(x):
    # TODO(synk): HF BERT default is erf-based GELU; tanh approximation used for TPU lowering.
    return 0.5 * x * (1.0 + jnp.tanh(0.7978845608028654 * (x + 0.044715 * x * x * x)))


# ---------------- fused Pallas kernel ----------------
def _make_fused_kernel(T):
    """Whole forward pass in one kernel. Activations are (T, H) with T = B*S."""

    def kernel(emb_ref, aux_ref, w_ref, f_ref, out_ref):
        scale = 1.0 / (HEAD_DIM ** 0.5)

        def fvec(row, n):                      # (1, n) f32 parameter vector
            return f_ref[row:row + 1, :][:, 0:n]

        # ---- block-diagonal additive attention mask, built in-kernel ----
        aux = aux_ref[...]                                         # (8, 128) f32
        keyadd = aux[AUX_KEYADD_ROW:AUX_KEYADD_ROW + 1, 0:T]       # (1, T)
        bid = aux[AUX_BID_ROW:AUX_BID_ROW + 1, 0:T]                # (1, T)
        col_bid = jnp.broadcast_to(bid, (T, T))                    # [i,j] -> batch of key j
        same = col_bid == col_bid.T                                # [i,j] -> same batch?
        mask = jnp.where(same, jnp.broadcast_to(keyadd, (T, T)), -1.0e9)

        # ---- embedding LayerNorm ----
        h = _ln(emb_ref[...], fvec(F_EMB_G, HIDDEN), fvec(F_EMB_B, HIDDEN))   # (T, H) f32

        for l in range(NUM_LAYERS):                                # static unroll (2 layers)
            r0 = l * LAYER_W_ROWS
            f0 = l * LAYER_F_ROWS
            xb = h.astype(jnp.bfloat16)

            # fused QKV: one (T,32)@(32,128) matmul; lanes [0,96) = [Q|K|V], rest zero
            w_qkv = w_ref[r0 + R_QKV:r0 + R_QKV + HIDDEN, :]
            qkv = (jnp.dot(xb, w_qkv, preferred_element_type=jnp.float32)
                   + f_ref[f0 + F_BQKV:f0 + F_BQKV + 1, :])        # (T, 128) f32

            ctx_heads = []
            for n in range(NUM_HEADS):                             # static unroll (2 heads)
                q = qkv[:, n * HEAD_DIM:(n + 1) * HEAD_DIM]
                k = qkv[:, HIDDEN + n * HEAD_DIM:HIDDEN + (n + 1) * HEAD_DIM]
                v = qkv[:, 2 * HIDDEN + n * HEAD_DIM:2 * HIDDEN + (n + 1) * HEAD_DIM]

                s = jnp.dot(q.astype(jnp.bfloat16), k.astype(jnp.bfloat16).T,
                            preferred_element_type=jnp.float32) * scale + mask
                s = s - jnp.max(s, axis=-1, keepdims=True)
                p = jnp.exp(s)
                p = p * pl.reciprocal(jnp.sum(p, axis=-1, keepdims=True), approx=True)
                ctx_heads.append(jnp.dot(p.astype(jnp.bfloat16), v.astype(jnp.bfloat16),
                                         preferred_element_type=jnp.float32))   # (T, HD)
            ctx_all = jnp.concatenate(ctx_heads, axis=-1)           # (T, H) lane concat

            # single fused output projection per layer
            w_o = w_ref[r0 + R_WO:r0 + R_WO + HIDDEN, :]
            attn_out = (jnp.dot(ctx_all.astype(jnp.bfloat16), w_o,
                                preferred_element_type=jnp.float32)
                        + f_ref[f0 + F_BO:f0 + F_BO + 1, :])[:, 0:HIDDEN]
            h1 = _ln(attn_out + h, fvec(f0 + F_G1, HIDDEN), fvec(f0 + F_B1, HIDDEN))

            # FFN
            w_i = w_ref[r0 + R_WI:r0 + R_WI + HIDDEN, :]
            inter = _gelu((jnp.dot(h1.astype(jnp.bfloat16), w_i,
                                   preferred_element_type=jnp.float32)
                           + f_ref[f0 + F_BI:f0 + F_BI + 1, :])[:, 0:INTER])
            w_o2 = w_ref[r0 + R_WO2:r0 + R_WO2 + INTER, :]
            ffn = (jnp.dot(inter.astype(jnp.bfloat16), w_o2,
                           preferred_element_type=jnp.float32)
                   + f_ref[f0 + F_BO2:f0 + F_BO2 + 1, :])[:, 0:HIDDEN]
            h = _ln(ffn + h1, fvec(f0 + F_G2, HIDDEN), fvec(f0 + F_B2, HIDDEN))

        # ---- pooler + classifier on ALL T rows (CLS rows selected in the wrapper) ----
        w_p = w_ref[R_WP:R_WP + HIDDEN, :]
        pooled = jnp.tanh((jnp.dot(h.astype(jnp.bfloat16), w_p,
                                   preferred_element_type=jnp.float32)
                           + f_ref[F_BP:F_BP + 1, :])[:, 0:HIDDEN])
        w_c = w_ref[R_WC:R_WC + HIDDEN, :]                          # lanes [0,C) used
        logits = (jnp.dot(pooled.astype(jnp.bfloat16), w_c,
                          preferred_element_type=jnp.float32)
                  + f_ref[F_BC:F_BC + 1, :])                        # (T, 128)
        out_ref[...] = jax.nn.sigmoid(logits)                       # lane-dense store

    return kernel


# ---------------- parameter init (deterministic, synthetic) ----------------
def init_params(key):
    keys = iter(jax.random.split(key, 8 + NUM_LAYERS * 8))

    def nrm(shape):
        return jax.random.normal(next(keys), shape, jnp.float32) * 0.02

    params = {
        'word_emb': nrm((VOCAB, HIDDEN)),
        'pos_emb': nrm((MAX_POS, HIDDEN)),
        'tok_emb': nrm((TYPE_VOCAB, HIDDEN)),
        'emb_g': jnp.ones((1, HIDDEN), jnp.float32),
        'emb_b': jnp.zeros((1, HIDDEN), jnp.float32),
        'wp': nrm((HIDDEN, HIDDEN)), 'bp': jnp.zeros((1, HIDDEN), jnp.float32),
        'wc': nrm((NUM_CLASSES, HIDDEN)), 'bc': jnp.zeros((1, NUM_CLASSES), jnp.float32),
        'layers': [],
    }
    for _ in range(NUM_LAYERS):
        params['layers'].append({
            'wq': nrm((HIDDEN, HIDDEN)), 'bq': jnp.zeros((1, HIDDEN), jnp.float32),
            'wk': nrm((HIDDEN, HIDDEN)), 'bk': jnp.zeros((1, HIDDEN), jnp.float32),
            'wv': nrm((HIDDEN, HIDDEN)), 'bv': jnp.zeros((1, HIDDEN), jnp.float32),
            'wo': nrm((HIDDEN, HIDDEN)), 'bo': jnp.zeros((1, HIDDEN), jnp.float32),
            'g1': jnp.ones((1, HIDDEN), jnp.float32), 'b1': jnp.zeros((1, HIDDEN), jnp.float32),
            'wi': nrm((INTER, HIDDEN)), 'bi': jnp.zeros((1, INTER), jnp.float32),
            'wo2': nrm((HIDDEN, INTER)), 'bo2': jnp.zeros((1, HIDDEN), jnp.float32),
            'g2': jnp.ones((1, HIDDEN), jnp.float32), 'b2': jnp.zeros((1, HIDDEN), jnp.float32),
        })
    return params


# ---------------- one-time parameter re-layout into two slabs (glue) ----------------
def prepare_fused_params(params):
    """Pack all weights into one bf16 (W_ROWS,128) slab (pre-transposed to (in,out),
    QKV fused across heads and Q/K/V) and all biases/LayerNorm params into one
    f32 (F_ROWS,128) slab. One DMA each instead of ~22."""
    w_slab = jnp.zeros((W_ROWS, LANES), jnp.float32)
    f_slab = jnp.zeros((F_ROWS, LANES), jnp.float32)

    def put_w(slab, row, w):                 # w: (in, out)
        r, c = w.shape
        return slab.at[row:row + r, 0:c].set(w)

    def put_f(slab, row, v):                 # v: (1, n)
        return slab.at[row:row + 1, 0:v.shape[-1]].set(v)

    for l, lp in enumerate(params['layers']):
        r0 = l * LAYER_W_ROWS
        f0 = l * LAYER_F_ROWS
        wqkv = jnp.concatenate([lp['wq'].T, lp['wk'].T, lp['wv'].T], axis=1)  # (H, 3H)
        w_slab = put_w(w_slab, r0 + R_QKV, wqkv)
        w_slab = put_w(w_slab, r0 + R_WO, lp['wo'].T)        # (H, H)
        w_slab = put_w(w_slab, r0 + R_WI, lp['wi'].T)        # (H, I)
        w_slab = put_w(w_slab, r0 + R_WO2, lp['wo2'].T)      # (I, H)

        f_slab = put_f(f_slab, f0 + F_BQKV,
                       jnp.concatenate([lp['bq'], lp['bk'], lp['bv']], axis=1))
        f_slab = put_f(f_slab, f0 + F_BO, lp['bo'])
        f_slab = put_f(f_slab, f0 + F_G1, lp['g1'])
        f_slab = put_f(f_slab, f0 + F_B1, lp['b1'])
        f_slab = put_f(f_slab, f0 + F_BI, lp['bi'])
        f_slab = put_f(f_slab, f0 + F_BO2, lp['bo2'])
        f_slab = put_f(f_slab, f0 + F_G2, lp['g2'])
        f_slab = put_f(f_slab, f0 + F_B2, lp['b2'])

    w_slab = put_w(w_slab, R_WP, params['wp'].T)             # (H, H)
    w_slab = put_w(w_slab, R_WC, params['wc'].T)             # (H, C)

    f_slab = put_f(f_slab, F_EMB_G, params['emb_g'])
    f_slab = put_f(f_slab, F_EMB_B, params['emb_b'])
    f_slab = put_f(f_slab, F_BP, params['bp'])
    f_slab = put_f(f_slab, F_BC, params['bc'])

    return {
        'word_emb': params['word_emb'], 'pos_emb': params['pos_emb'],
        'tok_emb': params['tok_emb'],
        'w_slab': w_slab.astype(jnp.bfloat16),
        'f_slab': f_slab,
    }


# ---------------- full forward (mirrors BertClassifier.forward) ----------------
def bert_classifier_forward(fp, input_ids, attention_mask=None,
                            token_type_ids=None, position_ids=None,
                            head_mask=None, labels=None):
    B, S = input_ids.shape
    T = B * S
    if attention_mask is None:
        attention_mask = jnp.ones((B, S), jnp.float32)
    if token_type_ids is None:
        token_type_ids = jnp.zeros((B, S), jnp.int32)
    if position_ids is None:
        position_ids = jnp.broadcast_to(jnp.arange(S, dtype=jnp.int32), (B, S))
    # TODO(synk): head_mask pruning not implemented (always None in this synthetic setup).

    # Embedding gathers are glue (plain JAX); everything else runs in the fused kernel.
    emb = (fp['word_emb'][input_ids]
           + fp['pos_emb'][position_ids]
           + fp['tok_emb'][token_type_ids]).astype(jnp.float32).reshape(T, HIDDEN)

    # Per-call scalar-ish data: additive key mask (HF style) and batch id per token.
    # The (T,T) block-diagonal mask itself is built inside the kernel.
    keyadd = (1.0 - attention_mask.astype(jnp.float32).reshape(T)) * -10000.0
    bid = jnp.repeat(jnp.arange(B, dtype=jnp.float32), S)
    aux = jnp.zeros((8, LANES), jnp.float32)
    aux = aux.at[AUX_KEYADD_ROW, :T].set(keyadd)
    aux = aux.at[AUX_BID_ROW, :T].set(bid)

    operands = (emb, aux, fp['w_slab'], fp['f_slab'])

    # NOTE(v7x): at production B/S, switch to grid=(B,) with dimension_semantics=
    # ("parallel",) and per-batch attention; at this toy size a single gridless call wins.
    out = pl.pallas_call(
        _make_fused_kernel(T),
        out_shape=jax.ShapeDtypeStruct((T, LANES), jnp.float32),   # lane-dense output
        in_specs=[pl.BlockSpec(memory_space=pltpu.MemorySpace.VMEM) for _ in operands],
        out_specs=pl.BlockSpec(memory_space=pltpu.MemorySpace.VMEM),
    )(*operands)

    probs = out[::S, :NUM_CLASSES]    # CLS row of each batch element, first C lanes

    loss = 0.0
    if labels is not None:
        # TODO(synk): Focal_Loss class definition is not provided in the reference module.
        pass
    return loss, probs


if __name__ == "__main__":
    key = jax.random.PRNGKey(0)
    pkey, dkey = jax.random.split(key)
    params = init_params(pkey)
    fused_params = prepare_fused_params(params)

    B, S = 2, 8
    input_ids = jax.random.randint(dkey, (B, S), 0, VOCAB, dtype=jnp.int32)
    attention_mask = jnp.ones((B, S), jnp.float32)

    loss, probs = bert_classifier_forward(fused_params, input_ids, attention_mask)
    probs = jax.block_until_ready(probs)
    assert probs.shape == (B, NUM_CLASSES)
    assert bool(jnp.all((probs >= 0.0) & (probs <= 1.0)))
    print("KERNEL_OK")
</pallas_src>

<mosaic_0001>
module attributes {stable_mosaic.version = 11 : i64} {
  func.func @kernel(%arg0: memref<16x32xf32, #tpu.memory_space<vmem>>, %arg1: memref<8x128xf32, #tpu.memory_space<vmem>>, %arg2: memref<384x128xbf16, #tpu.memory_space<vmem>>, %arg3: memref<24x128xf32, #tpu.memory_space<vmem>>, %arg4: memref<16x128xf32, #tpu.memory_space<vmem>>) attributes {dimension_semantics = [], scalar_prefetch = 0 : i64, scratch_operands = 0 : i64, tpu.core_type = #tpu.core_type<tc>} {
    %c0 = arith.constant 0 : index
    %c0_0 = arith.constant 0 : index
    %0 = vector.load %arg1[%c0, %c0_0] : memref<8x128xf32, #tpu.memory_space<vmem>>, vector<8x128xf32>
    %1 = vector.extract_strided_slice %0 {offsets = [0, 0], sizes = [1, 16], strides = [1, 1]} : vector<8x128xf32> to vector<1x16xf32>
    %2 = vector.extract_strided_slice %0 {offsets = [1, 0], sizes = [1, 16], strides = [1, 1]} : vector<8x128xf32> to vector<1x16xf32>
    %3 = vector.shape_cast %2 : vector<1x16xf32> to vector<1x16xf32>
    %4 = vector.broadcast %3 : vector<1x16xf32> to vector<16x16xf32>
    %5 = tpu.transpose %4, [1, 0] : vector<16x16xf32> -> vector<16x16xf32>
    %6 = arith.cmpf oeq, %4, %5 : vector<16x16xf32>
    %7 = vector.shape_cast %1 : vector<1x16xf32> to vector<1x16xf32>
    %8 = vector.broadcast %7 : vector<1x16xf32> to vector<16x16xf32>
    %cst = arith.constant -1.000000e+09 : f32
    %9 = vector.broadcast %cst : f32 to vector<16x16xf32>
    %10 = arith.select %6, %8, %9 : vector<16x16xi1>, vector<16x16xf32>
    %c0_1 = arith.constant 0 : index
    %c0_2 = arith.constant 0 : index
    %11 = vector.load %arg0[%c0_1, %c0_2] : memref<16x32xf32, #tpu.memory_space<vmem>>, vector<16x32xf32>
    %c16 = arith.constant 16 : index
    %c0_3 = arith.constant 0 : index
    %12 = vector.load %arg3[%c16, %c0_3] : memref<24x128xf32, #tpu.memory_space<vmem>>, vector<1x128xf32>
    %13 = vector.extract_strided_slice %12 {offsets = [0, 0], sizes = [1, 32], strides = [1, 1]} : vector<1x128xf32> to vector<1x32xf32>
    %c17 = arith.constant 17 : index
    %c0_4 = arith.constant 0 : index
    %14 = vector.load %arg3[%c17, %c0_4] : memref<24x128xf32, #tpu.memory_space<vmem>>, vector<1x128xf32>
    %15 = vector.extract_strided_slice %14 {offsets = [0, 0], sizes = [1, 32], strides = [1, 1]} : vector<1x128xf32> to vector<1x32xf32>
    %cst_5 = arith.constant dense<0.000000e+00> : vector<16xf32>
    %16 = vector.multi_reduction <add>, %11, %cst_5 [1] : vector<16x32xf32> to vector<16xf32>
    %17 = vector.shape_cast %16 : vector<16xf32> to vector<16x1xf32>
    %cst_6 = arith.constant 3.200000e+01 : f32
    %18 = vector.broadcast %cst_6 : f32 to vector<16x1xf32>
    %19 = arith.divf %17, %18 : vector<16x1xf32>
    %20 = vector.broadcast %19 : vector<16x1xf32> to vector<16x32xf32>
    %21 = arith.subf %11, %20 : vector<16x32xf32>
    %22 = arith.mulf %21, %21 : vector<16x32xf32>
    %cst_7 = arith.constant dense<0.000000e+00> : vector<16xf32>
    %23 = vector.multi_reduction <add>, %22, %cst_7 [1] : vector<16x32xf32> to vector<16xf32>
    %24 = vector.shape_cast %23 : vector<16xf32> to vector<16x1xf32>
    %cst_8 = arith.constant 3.200000e+01 : f32
    %25 = vector.broadcast %cst_8 : f32 to vector<16x1xf32>
    %26 = arith.divf %24, %25 : vector<16x1xf32>
    %27 = vector.broadcast %19 : vector<16x1xf32> to vector<16x32xf32>
    %28 = arith.subf %11, %27 : vector<16x32xf32>
    %cst_9 = arith.constant 9.99999996E-13 : f32
    %29 = vector.broadcast %cst_9 : f32 to vector<16x1xf32>
    %30 = arith.addf %26, %29 : vector<16x1xf32>
    %31 = math.rsqrt %30 : vector<16x1xf32>
    %32 = vector.broadcast %31 : vector<16x1xf32> to vector<16x32xf32>
    %33 = arith.mulf %28, %32 : vector<16x32xf32>
    %34 = vector.broadcast %13 : vector<1x32xf32> to vector<16x32xf32>
    %35 = arith.mulf %33, %34 : vector<16x32xf32>
    %36 = vector.broadcast %15 : vector<1x32xf32> to vector<16x32xf32>
    %37 = arith.addf %35, %36 : vector<16x32xf32>
    %38 = arith.truncf %37 : vector<16x32xf32> to vector<16x32xbf16>
    %c0_10 = arith.constant 0 : index
    %c0_11 = arith.constant 0 : index
    %39 = vector.load %arg2[%c0_10, %c0_11] : memref<384x128xbf16, #tpu.memory_space<vmem>>, vector<32x128xbf16>
    %cst_12 = arith.constant dense<0.000000e+00> : vector<16x128xf32>
    %40 = tpu.matmul %38, %39, %cst_12 {dimension_numbers = #tpu.dot_dimension_numbers<[1], [0], [0], [1], [0, 0, 1, 1], [], []>} : vector<16x32xbf16>, vector<32x128xbf16>, vector<16x128xf32> -> vector<16x128xf32>
    %c0_13 = arith.constant 0 : index
    %c0_14 = arith.constant 0 : index
    %41 = vector.load %arg3[%c0_13, %c0_14] : memref<24x128xf32, #tpu.memory_space<vmem>>, vector<1x128xf32>
    %42 = vector.broadcast %41 : vector<1x128xf32> to vector<16x128xf32>
    %43 = arith.addf %40, %42 : vector<16x128xf32>
    %44 = vector.extract_strided_slice %43 {offsets = [0, 0], sizes = [16, 16], strides = [1, 1]} : vector<16x128xf32> to vector<16x16xf32>
    %45 = vector.extract_strided_slice %43 {offsets = [0, 32], sizes = [16, 16], strides = [1, 1]} : vector<16x128xf32> to vector<16x16xf32>
    %46 = vector.extract_strided_slice %43 {offsets = [0, 64], sizes = [16, 16], strides = [1, 1]} : vector<16x128xf32> to vector<16x16xf32>
    %47 = arith.truncf %44 : vector<16x16xf32> to vector<16x16xbf16>
    %48 = arith.truncf %45 : vector<16x16xf32> to vector<16x16xbf16>
    %49 = tpu.transpose %48, [1, 0] : vector<16x16xbf16> -> vector<16x16xbf16>
    %cst_15 = arith.constant dense<0.000000e+00> : vector<16x16xf32>
    %50 = tpu.matmul %47, %49, %cst_15 {dimension_numbers = #tpu.dot_dimension_numbers<[1], [0], [0], [1], [0, 0, 1, 1], [], []>} : vector<16x16xbf16>, vector<16x16xbf16>, vector<16x16xf32> -> vector<16x16xf32>
    %cst_16 = arith.constant 2.500000e-01 : f32
    %51 = vector.broadcast %cst_16 : f32 to vector<16x16xf32>
    %52 = arith.mulf %50, %51 : vector<16x16xf32>
    %53 = arith.addf %52, %10 : vector<16x16xf32>
    %cst_17 = arith.constant dense<0xFF800000> : vector<16xf32>
    %54 = vector.multi_reduction <maximumf>, %53, %cst_17 [1] : vector<16x16xf32> to vector<16xf32>
    %55 = vector.shape_cast %54 : vector<16xf32> to vector<16x1xf32>
    %56 = vector.broadcast %55 : vector<16x1xf32> to vector<16x16xf32>
    %57 = arith.subf %53, %56 : vector<16x16xf32>
    %58 = math.exp %57 : vector<16x16xf32>
    %cst_18 = arith.constant dense<0.000000e+00> : vector<16xf32>
    %59 = vector.multi_reduction <add>, %58, %cst_18 [1] : vector<16x16xf32> to vector<16xf32>
    %60 = vector.shape_cast %59 : vector<16xf32> to vector<16x1xf32>
    %61 = tpu.reciprocal %60 {approx = true} : vector<16x1xf32> -> vector<16x1xf32>
    %62 = vector.broadcast %61 : vector<16x1xf32> to vector<16x16xf32>
    %63 = arith.mulf %58, %62 : vector<16x16xf32>
    %64 = arith.truncf %63 : vector<16x16xf32> to vector<16x16xbf16>
    %65 = arith.truncf %46 : vector<16x16xf32> to vector<16x16xbf16>
    %cst_19 = arith.constant dense<0.000000e+00> : vector<16x16xf32>
    %66 = tpu.matmul %64, %65, %cst_19 {dimension_numbers = #tpu.dot_dimension_numbers<[1], [0], [0], [1], [0, 0, 1, 1], [], []>} : vector<16x16xbf16>, vector<16x16xbf16>, vector<16x16xf32> -> vector<16x16xf32>
    %67 = vector.extract_strided_slice %43 {offsets = [0, 16], sizes = [16, 16], strides = [1, 1]} : vector<16x128xf32> to vector<16x16xf32>
    %68 = vector.extract_strided_slice %43 {offsets = [0, 48], sizes = [16, 16], strides = [1, 1]} : vector<16x128xf32> to vector<16x16xf32>
    %69 = vector.extract_strided_slice %43 {offsets = [0, 80], sizes = [16, 16], strides = [1, 1]} : vector<16x128xf32> to vector<16x16xf32>
    %70 = arith.truncf %67 : vector<16x16xf32> to vector<16x16xbf16>
    %71 = arith.truncf %68 : vector<16x16xf32> to vector<16x16xbf16>
    %72 = tpu.transpose %71, [1, 0] : vector<16x16xbf16> -> vector<16x16xbf16>
    %cst_20 = arith.constant dense<0.000000e+00> : vector<16x16xf32>
    %73 = tpu.matmul %70, %72, %cst_20 {dimension_numbers = #tpu.dot_dimension_numbers<[1], [0], [0], [1], [0, 0, 1, 1], [], []>} : vector<16x16xbf16>, vector<16x16xbf16>, vector<16x16xf32> -> vector<16x16xf32>
    %cst_21 = arith.constant 2.500000e-01 : f32
    %74 = vector.broadcast %cst_21 : f32 to vector<16x16xf32>
    %75 = arith.mulf %73, %74 : vector<16x16xf32>
    %76 = arith.addf %75, %10 : vector<16x16xf32>
    %cst_22 = arith.constant dense<0xFF800000> : vector<16xf32>
    %77 = vector.multi_reduction <maximumf>, %76, %cst_22 [1] : vector<16x16xf32> to vector<16xf32>
    %78 = vector.shape_cast %77 : vector<16xf32> to vector<16x1xf32>
    %79 = vector.broadcast %78 : vector<16x1xf32> to vector<16x16xf32>
    %80 = arith.subf %76, %79 : vector<16x16xf32>
    %81 = math.exp %80 : vector<16x16xf32>
    %cst_23 = arith.constant dense<0.000000e+00> : vector<16xf32>
    %82 = vector.multi_reduction <add>, %81, %cst_23 [1] : vector<16x16xf32> to vector<16xf32>
    %83 = vector.shape_cast %82 : vector<16xf32> to vector<16x1xf32>
    %84 = tpu.reciprocal %83 {approx = true} : vector<16x1xf32> -> vector<16x1xf32>
    %85 = vector.broadcast %84 : vector<16x1xf32> to vector<16x16xf32>
    %86 = arith.mulf %81, %85 : vector<16x16xf32>
    %87 = arith.truncf %86 : vector<16x16xf32> to vector<16x16xbf16>
    %88 = arith.truncf %69 : vector<16x16xf32> to vector<16x16xbf16>
    %cst_24 = arith.constant dense<0.000000e+00> : vector<16x16xf32>
    %89 = tpu.matmul %87, %88, %cst_24 {dimension_numbers = #tpu.dot_dimension_numbers<[1], [0], [0], [1], [0, 0, 1, 1], [], []>} : vector<16x16xbf16>, vector<16x16xbf16>, vector<16x16xf32> -> vector<16x16xf32>
    %90 = tpu.concatenate %66, %89 in 1 : vector<16x16xf32>, vector<16x16xf32> -> vector<16x32xf32>
    %c32 = arith.constant 32 : index
    %c0_25 = arith.constant 0 : index
    %91 = vector.load %arg2[%c32, %c0_25] : memref<384x128xbf16, #tpu.memory_space<vmem>>, vector<32x128xbf16>
    %92 = arith.truncf %90 : vector<16x32xf32> to vector<16x32xbf16>
    %cst_26 = arith.constant dense<0.000000e+00> : vector<16x128xf32>
    %93 = tpu.matmul %92, %91, %cst_26 {dimension_numbers = #tpu.dot_dimension_numbers<[1], [0], [0], [1], [0, 0, 1, 1], [], []>} : vector<16x32xbf16>, vector<32x128xbf16>, vector<16x128xf32> -> vector<16x128xf32>
    %c1 = arith.constant 1 : index
    %c0_27 = arith.constant 0 : index
    %94 = vector.load %arg3[%c1, %c0_27] : memref<24x128xf32, #tpu.memory_space<vmem>>, vector<1x128xf32>
    %95 = vector.broadcast %94 : vector<1x128xf32> to vector<16x128xf32>
    %96 = arith.addf %93, %95 : vector<16x128xf32>
    %97 = vector.extract_strided_slice %96 {offsets = [0, 0], sizes = [16, 32], strides = [1, 1]} : vector<16x128xf32> to vector<16x32xf32>
    %98 = arith.addf %97, %37 : vector<16x32xf32>
    %c2 = arith.constant 2 : index
    %c0_28 = arith.constant 0 : index
    %99 = vector.load %arg3[%c2, %c0_28] : memref<24x128xf32, #tpu.memory_space<vmem>>, vector<1x128xf32>
    %100 = vector.extract_strided_slice %99 {offsets = [0, 0], sizes = [1, 32], strides = [1, 1]} : vector<1x128xf32> to vector<1x32xf32>
    %c3 = arith.constant 3 : index
    %c0_29 = arith.constant 0 : index
    %101 = vector.load %arg3[%c3, %c0_29] : memref<24x128xf32, #tpu.memory_space<vmem>>, vector<1x128xf32>
    %102 = vector.extract_strided_slice %101 {offsets = [0, 0], sizes = [1, 32], strides = [1, 1]} : vector<1x128xf32> to vector<1x32xf32>
    %cst_30 = arith.constant dense<0.000000e+00> : vector<16xf32>
    %103 = vector.multi_reduction <add>, %98, %cst_30 [1] : vector<16x32xf32> to vector<16xf32>
    %104 = vector.shape_cast %103 : vector<16xf32> to vector<16x1xf32>
    %cst_31 = arith.constant 3.200000e+01 : f32
    %105 = vector.broadcast %cst_31 : f32 to vector<16x1xf32>
    %106 = arith.divf %104, %105 : vector<16x1xf32>
    %107 = vector.broadcast %106 : vector<16x1xf32> to vector<16x32xf32>
    %108 = arith.subf %98, %107 : vector<16x32xf32>
    %109 = arith.mulf %108, %108 : vector<16x32xf32>
    %cst_32 = arith.constant dense<0.000000e+00> : vector<16xf32>
    %110 = vector.multi_reduction <add>, %109, %cst_32 [1] : vector<16x32xf32> to vector<16xf32>
    %111 = vector.shape_cast %110 : vector<16xf32> to vector<16x1xf32>
    %cst_33 = arith.constant 3.200000e+01 : f32
    %112 = vector.broadcast %cst_33 : f32 to vector<16x1xf32>
    %113 = arith.divf %111, %112 : vector<16x1xf32>
    %114 = vector.broadcast %106 : vector<16x1xf32> to vector<16x32xf32>
    %115 = arith.subf %98, %114 : vector<16x32xf32>
    %cst_34 = arith.constant 9.99999996E-13 : f32
    %116 = vector.broadcast %cst_34 : f32 to vector<16x1xf32>
    %117 = arith.addf %113, %116 : vector<16x1xf32>
    %118 = math.rsqrt %117 : vector<16x1xf32>
    %119 = vector.broadcast %118 : vector<16x1xf32> to vector<16x32xf32>
    %120 = arith.mulf %115, %119 : vector<16x32xf32>
    %121 = vector.broadcast %100 : vector<1x32xf32> to vector<16x32xf32>
    %122 = arith.mulf %120, %121 : vector<16x32xf32>
    %123 = vector.broadcast %102 : vector<1x32xf32> to vector<16x32xf32>
    %124 = arith.addf %122, %123 : vector<16x32xf32>
    %c64 = arith.constant 64 : index
    %c0_35 = arith.constant 0 : index
    %125 = vector.load %arg2[%c64, %c0_35] : memref<384x128xbf16, #tpu.memory_space<vmem>>, vector<32x128xbf16>
    %126 = arith.truncf %124 : vector<16x32xf32> to vector<16x32xbf16>
    %cst_36 = arith.constant dense<0.000000e+00> : vector<16x128xf32>
    %127 = tpu.matmul %126, %125, %cst_36 {dimension_numbers = #tpu.dot_dimension_numbers<[1], [0], [0], [1], [0, 0, 1, 1], [], []>} : vector<16x32xbf16>, vector<32x128xbf16>, vector<16x128xf32> -> vector<16x128xf32>
    %c4 = arith.constant 4 : index
    %c0_37 = arith.constant 0 : index
    %128 = vector.load %arg3[%c4, %c0_37] : memref<24x128xf32, #tpu.memory_space<vmem>>, vector<1x128xf32>
    %129 = vector.broadcast %128 : vector<1x128xf32> to vector<16x128xf32>
    %130 = arith.addf %127, %129 : vector<16x128xf32>
    %131 = vector.extract_strided_slice %130 {offsets = [0, 0], sizes = [16, 64], strides = [1, 1]} : vector<16x128xf32> to vector<16x64xf32>
    %cst_38 = arith.constant 5.000000e-01 : f32
    %132 = vector.broadcast %cst_38 : f32 to vector<16x64xf32>
    %133 = arith.mulf %132, %131 : vector<16x64xf32>
    %cst_39 = arith.constant 4.471500e-02 : f32
    %134 = vector.broadcast %cst_39 : f32 to vector<16x64xf32>
    %135 = arith.mulf %134, %131 : vector<16x64xf32>
    %136 = arith.mulf %135, %131 : vector<16x64xf32>
    %137 = arith.mulf %136, %131 : vector<16x64xf32>
    %138 = arith.addf %131, %137 : vector<16x64xf32>
    %cst_40 = arith.constant 0.797884583 : f32
    %139 = vector.broadcast %cst_40 : f32 to vector<16x64xf32>
    %140 = arith.mulf %139, %138 : vector<16x64xf32>
    %141 = math.tanh %140 : vector<16x64xf32>
    %cst_41 = arith.constant 1.000000e+00 : f32
    %142 = vector.broadcast %cst_41 : f32 to vector<16x64xf32>
    %143 = arith.addf %142, %141 : vector<16x64xf32>
    %144 = arith.mulf %133, %143 : vector<16x64xf32>
    %c96 = arith.constant 96 : index
    %c0_42 = arith.constant 0 : index
    %145 = vector.load %arg2[%c96, %c0_42] : memref<384x128xbf16, #tpu.memory_space<vmem>>, vector<64x128xbf16>
    %146 = arith.truncf %144 : vector<16x64xf32> to vector<16x64xbf16>
    %cst_43 = arith.constant dense<0.000000e+00> : vector<16x128xf32>
    %147 = tpu.matmul %146, %145, %cst_43 {dimension_numbers = #tpu.dot_dimension_numbers<[1], [0], [0], [1], [0, 0, 1, 1], [], []>} : vector<16x64xbf16>, vector<64x128xbf16>, vector<16x128xf32> -> vector<16x128xf32>
    %c5 = arith.constant 5 : index
    %c0_44 = arith.constant 0 : index
    %148 = vector.load %arg3[%c5, %c0_44] : memref<24x128xf32, #tpu.memory_space<vmem>>, vector<1x128xf32>
    %149 = vector.broadcast %148 : vector<1x128xf32> to vector<16x128xf32>
    %150 = arith.addf %147, %149 : vector<16x128xf32>
    %151 = vector.extract_strided_slice %150 {offsets = [0, 0], sizes = [16, 32], strides = [1, 1]} : vector<16x128xf32> to vector<16x32xf32>
    %152 = arith.addf %151, %124 : vector<16x32xf32>
    %c6 = arith.constant 6 : index
    %c0_45 = arith.constant 0 : index
    %153 = vector.load %arg3[%c6, %c0_45] : memref<24x128xf32, #tpu.memory_space<vmem>>, vector<1x128xf32>
    %154 = vector.extract_strided_slice %153 {offsets = [0, 0], sizes = [1, 32], strides = [1, 1]} : vector<1x128xf32> to vector<1x32xf32>
    %c7 = arith.constant 7 : index
    %c0_46 = arith.constant 0 : index
    %155 = vector.load %arg3[%c7, %c0_46] : memref<24x128xf32, #tpu.memory_space<vmem>>, vector<1x128xf32>
    %156 = vector.extract_strided_slice %155 {offsets = [0, 0], sizes = [1, 32], strides = [1, 1]} : vector<1x128xf32> to vector<1x32xf32>
    %cst_47 = arith.constant dense<0.000000e+00> : vector<16xf32>
    %157 = vector.multi_reduction <add>, %152, %cst_47 [1] : vector<16x32xf32> to vector<16xf32>
    %158 = vector.shape_cast %157 : vector<16xf32> to vector<16x1xf32>
    %cst_48 = arith.constant 3.200000e+01 : f32
    %159 = vector.broadcast %cst_48 : f32 to vector<16x1xf32>
    %160 = arith.divf %158, %159 : vector<16x1xf32>
    %161 = vector.broadcast %160 : vector<16x1xf32> to vector<16x32xf32>
    %162 = arith.subf %152, %161 : vector<16x32xf32>
    %163 = arith.mulf %162, %162 : vector<16x32xf32>
    %cst_49 = arith.constant dense<0.000000e+00> : vector<16xf32>
    %164 = vector.multi_reduction <add>, %163, %cst_49 [1] : vector<16x32xf32> to vector<16xf32>
    %165 = vector.shape_cast %164 : vector<16xf32> to vector<16x1xf32>
    %cst_50 = arith.constant 3.200000e+01 : f32
    %166 = vector.broadcast %cst_50 : f32 to vector<16x1xf32>
    %167 = arith.divf %165, %166 : vector<16x1xf32>
    %168 = vector.broadcast %160 : vector<16x1xf32> to vector<16x32xf32>
    %169 = arith.subf %152, %168 : vector<16x32xf32>
    %cst_51 = arith.constant 9.99999996E-13 : f32
    %170 = vector.broadcast %cst_51 : f32 to vector<16x1xf32>
    %171 = arith.addf %167, %170 : vector<16x1xf32>
    %172 = math.rsqrt %171 : vector<16x1xf32>
    %173 = vector.broadcast %172 : vector<16x1xf32> to vector<16x32xf32>
    %174 = arith.mulf %169, %173 : vector<16x32xf32>
    %175 = vector.broadcast %154 : vector<1x32xf32> to vector<16x32xf32>
    %176 = arith.mulf %174, %175 : vector<16x32xf32>
    %177 = vector.broadcast %156 : vector<1x32xf32> to vector<16x32xf32>
    %178 = arith.addf %176, %177 : vector<16x32xf32>
    %179 = arith.truncf %178 : vector<16x32xf32> to vector<16x32xbf16>
    %c160 = arith.constant 160 : index
    %c0_52 = arith.constant 0 : index
    %180 = vector.load %arg2[%c160, %c0_52] : memref<384x128xbf16, #tpu.memory_space<vmem>>, vector<32x128xbf16>
    %cst_53 = arith.constant dense<0.000000e+00> : vector<16x128xf32>
    %181 = tpu.matmul %179, %180, %cst_53 {dimension_numbers = #tpu.dot_dimension_numbers<[1], [0], [0], [1], [0, 0, 1, 1], [], []>} : vector<16x32xbf16>, vector<32x128xbf16>, vector<16x128xf32> -> vector<16x128xf32>
    %c8 = arith.constant 8 : index
    %c0_54 = arith.constant 0 : index
    %182 = vector.load %arg3[%c8, %c0_54] : memref<24x128xf32, #tpu.memory_space<vmem>>, vector<1x128xf32>
    %183 = vector.broadcast %182 : vector<1x128xf32> to vector<16x128xf32>
    %184 = arith.addf %181, %183 : vector<16x128xf32>
    %185 = vector.extract_strided_slice %184 {offsets = [0, 0], sizes = [16, 16], strides = [1, 1]} : vector<16x128xf32> to vector<16x16xf32>
    %186 = vector.extract_strided_slice %184 {offsets = [0, 32], sizes = [16, 16], strides = [1, 1]} : vector<16x128xf32> to vector<16x16xf32>
    %187 = vector.extract_strided_slice %184 {offsets = [0, 64], sizes = [16, 16], strides = [1, 1]} : vector<16x128xf32> to vector<16x16xf32>
    %188 = arith.truncf %185 : vector<16x16xf32> to vector<16x16xbf16>
    %189 = arith.truncf %186 : vector<16x16xf32> to vector<16x16xbf16>
    %190 = tpu.transpose %189, [1, 0] : vector<16x16xbf16> -> vector<16x16xbf16>
    %cst_55 = arith.constant dense<0.000000e+00> : vector<16x16xf32>
    %191 = tpu.matmul %188, %190, %cst_55 {dimension_numbers = #tpu.dot_dimension_numbers<[1], [0], [0], [1], [0, 0, 1, 1], [], []>} : vector<16x16xbf16>, vector<16x16xbf16>, vector<16x16xf32> -> vector<16x16xf32>
    %cst_56 = arith.constant 2.500000e-01 : f32
    %192 = vector.broadcast %cst_56 : f32 to vector<16x16xf32>
    %193 = arith.mulf %191, %192 : vector<16x16xf32>
    %194 = arith.addf %193, %10 : vector<16x16xf32>
    %cst_57 = arith.constant dense<0xFF800000> : vector<16xf32>
    %195 = vector.multi_reduction <maximumf>, %194, %cst_57 [1] : vector<16x16xf32> to vector<16xf32>
    %196 = vector.shape_cast %195 : vector<16xf32> to vector<16x1xf32>
    %197 = vector.broadcast %196 : vector<16x1xf32> to vector<16x16xf32>
    %198 = arith.subf %194, %197 : vector<16x16xf32>
    %199 = math.exp %198 : vector<16x16xf32>
    %cst_58 = arith.constant dense<0.000000e+00> : vector<16xf32>
    %200 = vector.multi_reduction <add>, %199, %cst_58 [1] : vector<16x16xf32> to vector<16xf32>
    %201 = vector.shape_cast %200 : vector<16xf32> to vector<16x1xf32>
    %202 = tpu.reciprocal %201 {approx = true} : vector<16x1xf32> -> vector<16x1xf32>
    %203 = vector.broadcast %202 : vector<16x1xf32> to vector<16x16xf32>
    %204 = arith.mulf %199, %203 : vector<16x16xf32>
    %205 = arith.truncf %204 : vector<16x16xf32> to vector<16x16xbf16>
    %206 = arith.truncf %187 : vector<16x16xf32> to vector<16x16xbf16>
    %cst_59 = arith.constant dense<0.000000e+00> : vector<16x16xf32>
    %207 = tpu.matmul %205, %206, %cst_59 {dimension_numbers = #tpu.dot_dimension_numbers<[1], [0], [0], [1], [0, 0, 1, 1], [], []>} : vector<16x16xbf16>, vector<16x16xbf16>, vector<16x16xf32> -> vector<16x16xf32>
    %208 = vector.extract_strided_slice %184 {offsets = [0, 16], sizes = [16, 16], strides = [1, 1]} : vector<16x128xf32> to vector<16x16xf32>
    %209 = vector.extract_strided_slice %184 {offsets = [0, 48], sizes = [16, 16], strides = [1, 1]} : vector<16x128xf32> to vector<16x16xf32>
    %210 = vector.extract_strided_slice %184 {offsets = [0, 80], sizes = [16, 16], strides = [1, 1]} : vector<16x128xf32> to vector<16x16xf32>
    %211 = arith.truncf %208 : vector<16x16xf32> to vector<16x16xbf16>
    %212 = arith.truncf %209 : vector<16x16xf32> to vector<16x16xbf16>
    %213 = tpu.transpose %212, [1, 0] : vector<16x16xbf16> -> vector<16x16xbf16>
    %cst_60 = arith.constant dense<0.000000e+00> : vector<16x16xf32>
    %214 = tpu.matmul %211, %213, %cst_60 {dimension_numbers = #tpu.dot_dimension_numbers<[1], [0], [0], [1], [0, 0, 1, 1], [], []>} : vector<16x16xbf16>, vector<16x16xbf16>, vector<16x16xf32> -> vector<16x16xf32>
    %cst_61 = arith.constant 2.500000e-01 : f32
    %215 = vector.broadcast %cst_61 : f32 to vector<16x16xf32>
    %216 = arith.mulf %214, %215 : vector<16x16xf32>
    %217 = arith.addf %216, %10 : vector<16x16xf32>
    %cst_62 = arith.constant dense<0xFF800000> : vector<16xf32>
    %218 = vector.multi_reduction <maximumf>, %217, %cst_62 [1] : vector<16x16xf32> to vector<16xf32>
    %219 = vector.shape_cast %218 : vector<16xf32> to vector<16x1xf32>
    %220 = vector.broadcast %219 : vector<16x1xf32> to vector<16x16xf32>
    %221 = arith.subf %217, %220 : vector<16x16xf32>
    %222 = math.exp %221 : vector<16x16xf32>
    %cst_63 = arith.constant dense<0.000000e+00> : vector<16xf32>
    %223 = vector.multi_reduction <add>, %222, %cst_63 [1] : vector<16x16xf32> to vector<16xf32>
    %224 = vector.shape_cast %223 : vector<16xf32> to vector<16x1xf32>
    %225 = tpu.reciprocal %224 {approx = true} : vector<16x1xf32> -> vector<16x1xf32>
    %226 = vector.broadcast %225 : vector<16x1xf32> to vector<16x16xf32>
    %227 = arith.mulf %222, %226 : vector<16x16xf32>
    %228 = arith.truncf %227 : vector<16x16xf32> to vector<16x16xbf16>
    %229 = arith.truncf %210 : vector<16x16xf32> to vector<16x16xbf16>
    %cst_64 = arith.constant dense<0.000000e+00> : vector<16x16xf32>
    %230 = tpu.matmul %228, %229, %cst_64 {dimension_numbers = #tpu.dot_dimension_numbers<[1], [0], [0], [1], [0, 0, 1, 1], [], []>} : vector<16x16xbf16>, vector<16x16xbf16>, vector<16x16xf32> -> vector<16x16xf32>
    %231 = tpu.concatenate %207, %230 in 1 : vector<16x16xf32>, vector<16x16xf32> -> vector<16x32xf32>
    %c192 = arith.constant 192 : index
    %c0_65 = arith.constant 0 : index
    %232 = vector.load %arg2[%c192, %c0_65] : memref<384x128xbf16, #tpu.memory_space<vmem>>, vector<32x128xbf16>
    %233 = arith.truncf %231 : vector<16x32xf32> to vector<16x32xbf16>
    %cst_66 = arith.constant dense<0.000000e+00> : vector<16x128xf32>
    %234 = tpu.matmul %233, %232, %cst_66 {dimension_numbers = #tpu.dot_dimension_numbers<[1], [0], [0], [1], [0, 0, 1, 1], [], []>} : vector<16x32xbf16>, vector<32x128xbf16>, vector<16x128xf32> -> vector<16x128xf32>
    %c9 = arith.constant 9 : index
    %c0_67 = arith.constant 0 : index
    %235 = vector.load %arg3[%c9, %c0_67] : memref<24x128xf32, #tpu.memory_space<vmem>>, vector<1x128xf32>
    %236 = vector.broadcast %235 : vector<1x128xf32> to vector<16x128xf32>
    %237 = arith.addf %234, %236 : vector<16x128xf32>
    %238 = vector.extract_strided_slice %237 {offsets = [0, 0], sizes = [16, 32], strides = [1, 1]} : vector<16x128xf32> to vector<16x32xf32>
    %239 = arith.addf %238, %178 : vector<16x32xf32>
    %c10 = arith.constant 10 : index
    %c0_68 = arith.constant 0 : index
    %240 = vector.load %arg3[%c10, %c0_68] : memref<24x128xf32, #tpu.memory_space<vmem>>, vector<1x128xf32>
    %241 = vector.extract_strided_slice %240 {offsets = [0, 0], sizes = [1, 32], strides = [1, 1]} : vector<1x128xf32> to vector<1x32xf32>
    %c11 = arith.constant 11 : index
    %c0_69 = arith.constant 0 : index
    %242 = vector.load %arg3[%c11, %c0_69] : memref<24x128xf32, #tpu.memory_space<vmem>>, vector<1x128xf32>
    %243 = vector.extract_strided_slice %242 {offsets = [0, 0], sizes = [1, 32], strides = [1, 1]} : vector<1x128xf32> to vector<1x32xf32>
    %cst_70 = arith.constant dense<0.000000e+00> : vector<16xf32>
    %244 = vector.multi_reduction <add>, %239, %cst_70 [1] : vector<16x32xf32> to vector<16xf32>
    %245 = vector.shape_cast %244 : vector<16xf32> to vector<16x1xf32>
    %cst_71 = arith.constant 3.200000e+01 : f32
    %246 = vector.broadcast %cst_71 : f32 to vector<16x1xf32>
    %247 = arith.divf %245, %246 : vector<16x1xf32>
    %248 = vector.broadcast %247 : vector<16x1xf32> to vector<16x32xf32>
    %249 = arith.subf %239, %248 : vector<16x32xf32>
    %250 = arith.mulf %249, %249 : vector<16x32xf32>
    %cst_72 = arith.constant dense<0.000000e+00> : vector<16xf32>
    %251 = vector.multi_reduction <add>, %250, %cst_72 [1] : vector<16x32xf32> to vector<16xf32>
    %252 = vector.shape_cast %251 : vector<16xf32> to vector<16x1xf32>
    %cst_73 = arith.constant 3.200000e+01 : f32
    %253 = vector.broadcast %cst_73 : f32 to vector<16x1xf32>
    %254 = arith.divf %252, %253 : vector<16x1xf32>
    %255 = vector.broadcast %247 : vector<16x1xf32> to vector<16x32xf32>
    %256 = arith.subf %239, %255 : vector<16x32xf32>
    %cst_74 = arith.constant 9.99999996E-13 : f32
    %257 = vector.broadcast %cst_74 : f32 to vector<16x1xf32>
    %258 = arith.addf %254, %257 : vector<16x1xf32>
    %259 = math.rsqrt %258 : vector<16x1xf32>
    %260 = vector.broadcast %259 : vector<16x1xf32> to vector<16x32xf32>
    %261 = arith.mulf %256, %260 : vector<16x32xf32>
    %262 = vector.broadcast %241 : vector<1x32xf32> to vector<16x32xf32>
    %263 = arith.mulf %261, %262 : vector<16x32xf32>
    %264 = vector.broadcast %243 : vector<1x32xf32> to vector<16x32xf32>
    %265 = arith.addf %263, %264 : vector<16x32xf32>
    %c224 = arith.constant 224 : index
    %c0_75 = arith.constant 0 : index
    %266 = vector.load %arg2[%c224, %c0_75] : memref<384x128xbf16, #tpu.memory_space<vmem>>, vector<32x128xbf16>
    %267 = arith.truncf %265 : vector<16x32xf32> to vector<16x32xbf16>
    %cst_76 = arith.constant dense<0.000000e+00> : vector<16x128xf32>
    %268 = tpu.matmul %267, %266, %cst_76 {dimension_numbers = #tpu.dot_dimension_numbers<[1], [0], [0], [1], [0, 0, 1, 1], [], []>} : vector<16x32xbf16>, vector<32x128xbf16>, vector<16x128xf32> -> vector<16x128xf32>
    %c12 = arith.constant 12 : index
    %c0_77 = arith.constant 0 : index
    %269 = vector.load %arg3[%c12, %c0_77] : memref<24x128xf32, #tpu.memory_space<vmem>>, vector<1x128xf32>
    %270 = vector.broadcast %269 : vector<1x128xf32> to vector<16x128xf32>
    %271 = arith.addf %268, %270 : vector<16x128xf32>
    %272 = vector.extract_strided_slice %271 {offsets = [0, 0], sizes = [16, 64], strides = [1, 1]} : vector<16x128xf32> to vector<16x64xf32>
    %cst_78 = arith.constant 5.000000e-01 : f32
    %273 = vector.broadcast %cst_78 : f32 to vector<16x64xf32>
    %274 = arith.mulf %273, %272 : vector<16x64xf32>
    %cst_79 = arith.constant 4.471500e-02 : f32
    %275 = vector.broadcast %cst_79 : f32 to vector<16x64xf32>
    %276 = arith.mulf %275, %272 : vector<16x64xf32>
    %277 = arith.mulf %276, %272 : vector<16x64xf32>
    %278 = arith.mulf %277, %272 : vector<16x64xf32>
    %279 = arith.addf %272, %278 : vector<16x64xf32>
    %cst_80 = arith.constant 0.797884583 : f32
    %280 = vector.broadcast %cst_80 : f32 to vector<16x64xf32>
    %281 = arith.mulf %280, %279 : vector<16x64xf32>
    %282 = math.tanh %281 : vector<16x64xf32>
    %cst_81 = arith.constant 1.000000e+00 : f32
    %283 = vector.broadcast %cst_81 : f32 to vector<16x64xf32>
    %284 = arith.addf %283, %282 : vector<16x64xf32>
    %285 = arith.mulf %274, %284 : vector<16x64xf32>
    %c256 = arith.constant 256 : index
    %c0_82 = arith.constant 0 : index
    %286 = vector.load %arg2[%c256, %c0_82] : memref<384x128xbf16, #tpu.memory_space<vmem>>, vector<64x128xbf16>
    %287 = arith.truncf %285 : vector<16x64xf32> to vector<16x64xbf16>
    %cst_83 = arith.constant dense<0.000000e+00> : vector<16x128xf32>
    %288 = tpu.matmul %287, %286, %cst_83 {dimension_numbers = #tpu.dot_dimension_numbers<[1], [0], [0], [1], [0, 0, 1, 1], [], []>} : vector<16x64xbf16>, vector<64x128xbf16>, vector<16x128xf32> -> vector<16x128xf32>
    %c13 = arith.constant 13 : index
    %c0_84 = arith.constant 0 : index
    %289 = vector.load %arg3[%c13, %c0_84] : memref<24x128xf32, #tpu.memory_space<vmem>>, vector<1x128xf32>
    %290 = vector.broadcast %289 : vector<1x128xf32> to vector<16x128xf32>
    %291 = arith.addf %288, %290 : vector<16x128xf32>
    %292 = vector.extract_strided_slice %291 {offsets = [0, 0], sizes = [16, 32], strides = [1, 1]} : vector<16x128xf32> to vector<16x32xf32>
    %293 = arith.addf %292, %265 : vector<16x32xf32>
    %c14 = arith.constant 14 : index
    %c0_85 = arith.constant 0 : index
    %294 = vector.load %arg3[%c14, %c0_85] : memref<24x128xf32, #tpu.memory_space<vmem>>, vector<1x128xf32>
    %295 = vector.extract_strided_slice %294 {offsets = [0, 0], sizes = [1, 32], strides = [1, 1]} : vector<1x128xf32> to vector<1x32xf32>
    %c15 = arith.constant 15 : index
    %c0_86 = arith.constant 0 : index
    %296 = vector.load %arg3[%c15, %c0_86] : memref<24x128xf32, #tpu.memory_space<vmem>>, vector<1x128xf32>
    %297 = vector.extract_strided_slice %296 {offsets = [0, 0], sizes = [1, 32], strides = [1, 1]} : vector<1x128xf32> to vector<1x32xf32>
    %cst_87 = arith.constant dense<0.000000e+00> : vector<16xf32>
    %298 = vector.multi_reduction <add>, %293, %cst_87 [1] : vector<16x32xf32> to vector<16xf32>
    %299 = vector.shape_cast %298 : vector<16xf32> to vector<16x1xf32>
    %cst_88 = arith.constant 3.200000e+01 : f32
    %300 = vector.broadcast %cst_88 : f32 to vector<16x1xf32>
    %301 = arith.divf %299, %300 : vector<16x1xf32>
    %302 = vector.broadcast %301 : vector<16x1xf32> to vector<16x32xf32>
    %303 = arith.subf %293, %302 : vector<16x32xf32>
    %304 = arith.mulf %303, %303 : vector<16x32xf32>
    %cst_89 = arith.constant dense<0.000000e+00> : vector<16xf32>
    %305 = vector.multi_reduction <add>, %304, %cst_89 [1] : vector<16x32xf32> to vector<16xf32>
    %306 = vector.shape_cast %305 : vector<16xf32> to vector<16x1xf32>
    %cst_90 = arith.constant 3.200000e+01 : f32
    %307 = vector.broadcast %cst_90 : f32 to vector<16x1xf32>
    %308 = arith.divf %306, %307 : vector<16x1xf32>
    %309 = vector.broadcast %301 : vector<16x1xf32> to vector<16x32xf32>
    %310 = arith.subf %293, %309 : vector<16x32xf32>
    %cst_91 = arith.constant 9.99999996E-13 : f32
    %311 = vector.broadcast %cst_91 : f32 to vector<16x1xf32>
    %312 = arith.addf %308, %311 : vector<16x1xf32>
    %313 = math.rsqrt %312 : vector<16x1xf32>
    %314 = vector.broadcast %313 : vector<16x1xf32> to vector<16x32xf32>
    %315 = arith.mulf %310, %314 : vector<16x32xf32>
    %316 = vector.broadcast %295 : vector<1x32xf32> to vector<16x32xf32>
    %317 = arith.mulf %315, %316 : vector<16x32xf32>
    %318 = vector.broadcast %297 : vector<1x32xf32> to vector<16x32xf32>
    %319 = arith.addf %317, %318 : vector<16x32xf32>
    %c320 = arith.constant 320 : index
    %c0_92 = arith.constant 0 : index
    %320 = vector.load %arg2[%c320, %c0_92] : memref<384x128xbf16, #tpu.memory_space<vmem>>, vector<32x128xbf16>
    %321 = arith.truncf %319 : vector<16x32xf32> to vector<16x32xbf16>
    %cst_93 = arith.constant dense<0.000000e+00> : vector<16x128xf32>
    %322 = tpu.matmul %321, %320, %cst_93 {dimension_numbers = #tpu.dot_dimension_numbers<[1], [0], [0], [1], [0, 0, 1, 1], [], []>} : vector<16x32xbf16>, vector<32x128xbf16>, vector<16x128xf32> -> vector<16x128xf32>
    %c18 = arith.constant 18 : index
    %c0_94 = arith.constant 0 : index
    %323 = vector.load %arg3[%c18, %c0_94] : memref<24x128xf32, #tpu.memory_space<vmem>>, vector<1x128xf32>
    %324 = vector.broadcast %323 : vector<1x128xf32> to vector<16x128xf32>
    %325 = arith.addf %322, %324 : vector<16x128xf32>
    %326 = vector.extract_strided_slice %325 {offsets = [0, 0], sizes = [16, 32], strides = [1, 1]} : vector<16x128xf32> to vector<16x32xf32>
    %327 = math.tanh %326 : vector<16x32xf32>
    %c352 = arith.constant 352 : index
    %c0_95 = arith.constant 0 : index
    %328 = vector.load %arg2[%c352, %c0_95] : memref<384x128xbf16, #tpu.memory_space<vmem>>, vector<32x128xbf16>
    %329 = arith.truncf %327 : vector<16x32xf32> to vector<16x32xbf16>
    %cst_96 = arith.constant dense<0.000000e+00> : vector<16x128xf32>
    %330 = tpu.matmul %329, %328, %cst_96 {dimension_numbers = #tpu.dot_dimension_numbers<[1], [0], [0], [1], [0, 0, 1, 1], [], []>} : vector<16x32xbf16>, vector<32x128xbf16>, vector<16x128xf32> -> vector<16x128xf32>
    %c19 = arith.constant 19 : index
    %c0_97 = arith.constant 0 : index
    %331 = vector.load %arg3[%c19, %c0_97] : memref<24x128xf32, #tpu.memory_space<vmem>>, vector<1x128xf32>
    %332 = vector.broadcast %331 : vector<1x128xf32> to vector<16x128xf32>
    %333 = arith.addf %330, %332 : vector<16x128xf32>
    %334 = arith.negf %333 : vector<16x128xf32>
    %335 = math.exp %334 : vector<16x128xf32>
    %cst_98 = arith.constant 1.000000e+00 : f32
    %336 = vector.broadcast %cst_98 : f32 to vector<16x128xf32>
    %337 = arith.addf %336, %335 : vector<16x128xf32>
    %338 = arith.divf %336, %337 : vector<16x128xf32>
    %c0_99 = arith.constant 0 : index
    %c0_100 = arith.constant 0 : index
    %339 = vector.load %arg4[%c0_99, %c0_100] : memref<16x128xf32, #tpu.memory_space<vmem>>, vector<16x128xf32>
    tpu.vector_store %arg4[%c0_99, %c0_100], %338 {strides = array<i32>} : memref<16x128xf32, #tpu.memory_space<vmem>>, vector<16x128xf32>,
    return
  }
}

</mosaic_0001>

<bundles_post_ra>
// kernel: tpu_custom_call.1
= control target key start
LH: loop header
LB: loop body
LE: loop exit
PB: predicated region body
PF: predicated region fallthrough
CT: control target
= control target key end

     0   :  { %9 = vsyncpa [#allocation3], 0  ;;  %s1788_s0 = inlined_call_operand.hbm [shape: f32[16,32], index: 0, kind: input, shape index: {}]   ;;  %s1789_s1 = inlined_call_operand.hbm [shape: f32[8,128], index: 1, kind: input, shape index: {}]   ;;  %s1790_s2 = inlined_call_operand.hbm [shape: bf16[384,128], index: 2, kind: input, shape index: {}]   ;;  %s1791_s3 = inlined_call_operand.hbm [shape: f32[24,128], index: 3, kind: input, shape index: {}]   ;;  %s1792_s4 = inlined_call_operand.hbm [shape: f32[16,128], index: 4, kind: output, shape index: {}]  }
   0x1   :  { %10 = vsyncpa [#allocation6], 0 }
   0x2   :  { %11 = vsyncpa [#allocation9], 0  ;;  %s31_s17 = sshll.u32 %s1789_s1, 4  ;;  %s32_s17 = int_to_ptr.hbm [resolvable:$true] %s31_s17 }
   0x3   :  { %12 = vsyncpa [#allocation4], 0  ;;  %s1582_s18 = smov [#allocation5]   ;;  %s17_s22 = sshll.u32 %s1788_s0, 4  ;;  %s18_s22 = int_to_ptr.hbm [resolvable:$true] %s17_s22 }
   0x4   :  { %s33_s19 = sshll.u32 %s1582_s18, 4  ;;  %s1583_s23 = smov [#allocation2]   ;;  %s34_s19 = int_to_ptr.vmem [resolvable:$true] %s33_s19 }
   0x5   :  { %36 = dma.hbm_to_vmem [thread:$0]  %s32_s17, 128, %s34_s19, [#allocation6]  }
   0x6   :  { %s19_s24 = sshll.u32 %s1583_s23, 4  ;;  %s1584_s25 = smov 128   ;;  %s20_s24 = int_to_ptr.vmem [resolvable:$true] %s19_s24 }
   0x7   :  { %s1585_s26 = smov 8   ;;  %s41_s28 = sshll.u32 %s1790_s2, 4  ;;  %s42_s28 = int_to_ptr.hbm [resolvable:$true] %s41_s28 }
   0x8   :  { %25 = dma.hbm_to_vmem [thread:$0]  %s18_s22, 256, %s20_s24, [#allocation3], %s1584_s25, %s1584_s25, %s1585_s26  }
   0x9   :  { %s1586_s29 = smov [#allocation7]   ;;  %s54_s6 = sshll.u32 %s1791_s3, 4  ;;  %s55_s6 = int_to_ptr.hbm [resolvable:$true] %s54_s6 }
   0xa   :  { %s43_s30 = sshll.u32 %s1586_s29, 4  ;;  %s1587_s7 = smov 64   ;;  %s44_s30 = int_to_ptr.vmem [resolvable:$true] %s43_s30 }
   0xb   :  { %s1588_s8 = smov 4   ;;  %s1589_s9 = smov [#allocation8]  }
   0xc   :  { %49 = dma.hbm_to_vmem [thread:$0]  %s42_s28, 3072, %s44_s30, [#allocation6], %s1587_s7, %s1587_s7, %s1588_s8  }
   0xd   :  { %s56_s10 = sshll.u32 %s1589_s9, 4  ;;  %s57_s10 = int_to_ptr.vmem [resolvable:$true] %s56_s10 }
   0xe   :  { %62 = dma.hbm_to_vmem [thread:$0]  %s55_s6, 384, %s57_s10, [#allocation9], %s1584_s25, %s1584_s25, %s1585_s26  }
   0xf   :  { %1574 = dma.done.wait [#allocation3], 256  }
  0x10   :  { %1575 = vsyncadd [#allocation3], 4294967040 }
  0x11   :  { %1576 = dma.done.wait [#allocation6], 3200  }
  0x12   :  { %1577 = vsyncadd [#allocation6], 4294964096 }
  0x13   :  { %1578 = dma.done.wait [#allocation9], 384  }
  0x14   :  { %1579 = vsyncadd [#allocation9], 4294966912  ;;  %vm123_vm0 = vcmask 261120   ;;  %v119_v0 = vld [vmem:[#allocation2] sm:$0xff]  ;;  %v120_v1 = vld [vmem:[#allocation2 + $0x8] sm:$0xff]  ;;  %v1590_v4 = vmov 32.0  }
  0x15   :  { %v124_v2 = vsel %vm123_vm0, %v119_v0, 0.0  ;;  %v127_v3 = vsel %vm123_vm0, %v120_v1, 0.0  ;;  %1380 = vrcp.f32 %v1590_v4  ;;  %v1311_v21 = vld [vmem:[#allocation7 + $0x8] sm:$0xff]  ;;  %v1310_v23 = vld [vmem:[#allocation7] sm:$0xff]  ;;  %v1360_v42 = vld [vmem:[#allocation8 + $0x10] ss:$0 sm:$0xff] }
  0x16   :  { %125 = vadd.xlane.f32.xlu0 %v124_v2  ;;  %209 = vmatpush.bf16.msra.mxu0 %v1311_v21  ;;  %v1361_v47 = vld [vmem:[#allocation8 + $0x11] ss:$0 sm:$0xff]  ;;  %v80_v52 = vld [vmem:[#allocation5] sm:$0xff]  ;;  %v1362_v55 = vld [vmem:[#allocation8] ss:$0 sm:$0xff]  ;;  %s1591_s2 = smov 112  }
  0x17   :  { %v81_v53 = vperm.slane %v80_v52, 1  ;;  %s1592_s3 = smov 96   ;;  %s1593_s11 = smov 80   ;;  %vm221_vm8 = vcmask 130048   ;;  %v116_v2 = vperm.slane %v80_v52, 0 }
  0x18   :  { %s1594_s12 = smov 48   ;;  %s1595_s13 = smov 16  }
  0x19   :  { %s1596_s14 = smov [#allocation10]   ;;  %s1179_s18 = sshll.u32 %s1792_s4, 4  ;;  %s1180_s18 = int_to_ptr.hbm [resolvable:$true] %s1179_s18 }
  0x1a   :  { %210 = vmatpush.bf16.msra.mxu0 %v1310_v23  ;;  %s1177_s15 = sshll.u32 %s1596_s14, 4  ;;  %s1178_s15 = int_to_ptr.vmem [resolvable:$true] %s1177_s15 }
  0x1b   :  { %v1381_v5 = vpop.eup %1380 }
  0x1c   :  { %v131_v6 = vmul.f32 32.0, %v1381_v5  ;;  %vm135_vm1 = vweird.f32 %v1381_v5 }
  0x1e   :  { %128 = vadd.xlane.f32.xlu0 %v127_v3  ;;  %v132_v7 = vsub.f32 1.0, %v131_v6 }
  0x20   :  { %v133_v8 = vmul.f32 %v1381_v5, %v132_v7 }
  0x22   :  { %v134_v9 = vadd.f32 %v1381_v5, %v133_v8 }
  0x24   :  { %v1644_v10 = vsel %vm135_vm1, %v1381_v5, %v134_v9 }
  0x89   :  { %v126_v11 = vpop.xlane.xlu0 %125 }
  0x8a   :  { %v137_v12 = vmul.f32 %v1644_v10, %v126_v11 }
  0x8c   :  { %v139_v13 = vsub.f32 %v119_v0, %v137_v12 }
  0x8e   :  { %v141_v14 = vmul.f32 %v139_v13, %v139_v13 }
  0x90   :  { %v143_v15 = vsel %vm123_vm0, %v141_v14, 0.0 }
  0x91   :  { %144 = vadd.xlane.f32.xlu1 %v143_v15  ;;  %v129_v16 = vpop.xlane.xlu0 %128 }
  0x92   :  { %v138_v17 = vmul.f32 %v1644_v10, %v129_v16 }
  0x94   :  { %v140_v18 = vsub.f32 %v120_v1, %v138_v17 }
  0x96   :  { %v142_v19 = vmul.f32 %v140_v18, %v140_v18 }
  0x98   :  { %v146_v20 = vsel %vm123_vm0, %v142_v19, 0.0 }
  0x99   :  { %147 = vadd.xlane.f32.xlu1 %v146_v20 }
  0xd3   :  { %82 = vxpose.xlu1.b32.start [1/2] (short) (narrow) %v81_v53, 16 }
  0xdb   :  { %83 = vxpose.xlu1.b32.end [2/2] (short) (narrow) %v81_v53, 16 }
 0x104   :  { %v145_v22 = vpop.xlane.xlu1 %144 }
 0x105   :  { %v149_v24 = vmul.f32 %v145_v22, %v1644_v10 }
 0x107   :  { %v151_v25 = vadd.f32 1e-12, %v149_v24 }
 0x109   :  { %1382 = vrsqrt.f32 %v151_v25  ;;  %vm159_vm3 = vweird.f32 %v151_v25 }
 0x10c   :  { %v148_v26 = vpop.xlane.xlu1 %147 }
 0x10d   :  { %v150_v27 = vmul.f32 %v148_v26, %v1644_v10 }
 0x10f   :  { %v1383_v28 = vpop.eup %1382  ;;  %v152_v29 = vadd.f32 1e-12, %v150_v27 }
 0x110   :  { %v154_v30 = vmul.f32 %v1383_v28, %v151_v25  ;;  %vm160_vm2 = vweird.f32 %v1383_v28 }
 0x111   :  { %1384 = vrsqrt.f32 %v152_v29  ;;  %vm161_vm4 = vmor %vm159_vm3, %vm160_vm2  ;;  %vm169_vm6 = vweird.f32 %v152_v29  ;;  %vm549_vm2 = vcmask 523264  }
 0x112   :  { %v155_v31 = vmul.f32 %v1383_v28, %v154_v30 }
 0x114   :  { %v156_v32 = vmul.f32 0.5, %v155_v31 }
 0x116   :  { %v157_v33 = vsub.f32 1.5, %v156_v32 }
 0x117   :  { %v1385_v34 = vpop.eup %1384 }
 0x118   :  { %v158_v35 = vmul.f32 %v1383_v28, %v157_v33  ;;  %v164_v36 = vmul.f32 %v1385_v34, %v152_v29  ;;  %vm170_vm5 = vweird.f32 %v1385_v34 }
 0x119   :  { %vm171_vm7 = vmor %vm169_vm6, %vm170_vm5 }
 0x11a   :  { %v165_v37 = vmul.f32 %v1385_v34, %v164_v36  ;;  %v162_v38 = vsel %vm161_vm4, %v1383_v28, %v158_v35 }
 0x11b   :  { %v173_v41 = vmul.f32 %v162_v38, %v139_v13 }
 0x11c   :  { %v166_v39 = vmul.f32 0.5, %v165_v37 }
 0x11d   :  { %v176_v46 = vmul.f32 %v1360_v42, %v173_v41 }
 0x11e   :  { %v167_v40 = vsub.f32 1.5, %v166_v39 }
 0x11f   :  { %v1652_v49 = vadd.f32 %v1361_v47, %v176_v46 }
 0x120   :  { %v168_v43 = vmul.f32 %v1385_v34, %v167_v40 }
 0x122   :  { %v172_v44 = vsel %vm171_vm7, %v1385_v34, %v168_v43 }
 0x123   :  { %v174_v45 = vmul.f32 %v172_v44, %v140_v18 }
 0x125   :  { %v177_v48 = vmul.f32 %v1360_v42, %v174_v45 }
 0x127   :  { %v1654_v50 = vadd.f32 %v1361_v47, %v177_v48 }
 0x129   :  { %v181_v51 = vpack.c.bf16 %v1654_v50, %v1652_v49 }
 0x12b   :  { %1202 = vmatmul.msk.bf16.vlgmr.msra.gmra.mxu0 %vm123_vm0, %v181_v51 }
 0x177   :  { %v98_v1 = vpop.trf.xlu1 }
 0x178   :  { %vm114_vm9 = vcmp.eq.f32.partialorder %v81_v53, %v98_v1 }
 0x179   :  { %v1672_v4 = vsel %vm114_vm9, %v116_v2, -1e+09 }
 0x17f   :  { %v99_v6 = vpop.trf.xlu1 }
 0x180   :  { %vm115_vm10 = vcmp.eq.f32.partialorder %v81_v53, %v99_v6 }
 0x181   :  { %v1676_v11 = vsel %vm115_vm10, %v116_v2, -1e+09 }
 0x1a8   :  { %v212_v54 = vpop.f32.mrf.mxu0 }
 0x1a9   :  { %v213_v57 = vadd.f32 %v1362_v55, %v212_v54 }
 0x1b0   :  { %v214_v56 = vpop.f32.mrf.mxu0 }
 0x1b1   :  { %v215_v58 = vadd.f32 %v1362_v55, %v214_v56 }
 0x1b3   :  { %v1659_v59 = vpack.c.bf16 %v215_v58, %v213_v57 }
 0x1b5   :  { %289 = vrot.lane.b32.xlu0 %v1659_v59, %s1591_s2  ;;  %219 = vrot.lane.b32.xlu2 %v1659_v59, %s1592_s3 }
 0x1bd   :  { %291 = vrot.lane.b32.xlu2 %v1659_v59, %s1593_s11 }
 0x20f   :  { %v220_v60 = vpop.permute.xlu2 %219 }
 0x210   :  { %v226_v61 = vsel %vm221_vm8, %v220_v60, 0 }
 0x211   :  { %235 = vmatpush.bf16.xpose.msra.mxu1 %v226_v61  ;;  %v1313_v61 = vld [vmem:[#allocation7 + $0x18] sm:$0xff] }
 0x212   :  { %398 = vmatpush.bf16.msrb.mxu0 %v1313_v61 }
 0x217   :  { %v292_v62 = vpop.permute.xlu2 %291 }
 0x218   :  { %1203 = vmatmul.msk.bf16.vlgmr.msra.gmra.mxu1 %vm221_vm8, %v1659_v59  ;;  %v297_v63 = vsel %vm221_vm8, %v292_v62, 0 }
 0x219   :  { %306 = vmatpush.bf16.xpose.msra.mxu3 %v297_v63 }
 0x227   :  { %v290_v0 = vpop.permute.xlu0 %289 }
 0x228   :  { %1205 = vmatmul.msk.bf16.vlgmr.msra.gmra.mxu3 %vm221_vm8, %v290_v0 }
 0x295   :  { %v237_v3 = vpop.f32.mrf.mxu1 }
 0x296   :  { %v242_v5 = vmul.f32 0.25, %v237_v3  ;;  %v1312_v3 = vld [vmem:[#allocation7 + $0x10] sm:$0xff] }
 0x297   :  { %399 = vmatpush.bf16.msrb.mxu0 %v1312_v3  ;;  %v1366_v3 = vld [vmem:[#allocation8 + $0x4] ss:$0 sm:$0xff] }
 0x298   :  { %v244_v7 = vadd.f32 %v242_v5, %v1672_v4 }
 0x29a   :  { %v246_v8 = vsel %vm221_vm8, %v244_v7, -inf }
 0x29b   :  { %247 = vmax.xlane.f32.xlu2 %v246_v8 }
 0x29d   :  { %v239_v9 = vpop.f32.mrf.mxu1 }
 0x29e   :  { %v243_v12 = vmul.f32 0.25, %v239_v9 }
 0x2a0   :  { %v245_v13 = vadd.f32 %v243_v12, %v1676_v11 }
 0x2a2   :  { %v249_v14 = vsel %vm221_vm8, %v245_v13, -inf }
 0x2a3   :  { %250 = vmax.xlane.f32.xlu0 %v249_v14 }
 0x2ab   :  { %v308_v15 = vpop.f32.mrf.mxu3 }
 0x2ac   :  { %v313_v16 = vmul.f32 0.25, %v308_v15 }
 0x2ae   :  { %v315_v17 = vadd.f32 %v313_v16, %v1672_v4 }
 0x2b0   :  { %v317_v18 = vsel %vm221_vm8, %v315_v17, -inf }
 0x2b1   :  { %318 = vmax.xlane.f32.xlu2 %v317_v18 }
 0x2b3   :  { %v310_v19 = vpop.f32.mrf.mxu3 }
 0x2b4   :  { %v314_v20 = vmul.f32 0.25, %v310_v19 }
 0x2b6   :  { %v316_v21 = vadd.f32 %v314_v20, %v1676_v11 }
 0x2b8   :  { %v320_v22 = vsel %vm221_vm8, %v316_v21, -inf }
 0x2b9   :  { %321 = vmax.xlane.f32.xlu2 %v320_v22 }
 0x30e   :  { %v248_v23 = vpop.xlane.xlu2 %247 }
 0x30f   :  { %v252_v24 = vsub.f32 %v244_v7, %v248_v23 }
 0x311   :  { %v254_v25 = vmul.f32 1.442695, %v252_v24 }
 0x313   :  { %1386 = vpow2.f32 %v254_v25 }
 0x316   :  { %v251_v26 = vpop.xlane.xlu0 %250 }
 0x317   :  { %v253_v27 = vsub.f32 %v245_v13, %v251_v26  ;;  %v1363_v13 = vld [vmem:[#allocation8 + $0x1] ss:$0 sm:$0xff] }
 0x319   :  { %v1387_v28 = vpop.eup %1386  ;;  %v256_v29 = vmul.f32 1.442695, %v253_v27 }
 0x31a   :  { %v258_v30 = vsel %vm221_vm8, %v1387_v28, 0.0 }
 0x31b   :  { %1388 = vpow2.f32 %v256_v29  ;;  %259 = vadd.xlane.f32.xlu2 %v258_v30 }
 0x321   :  { %v1389_v31 = vpop.eup %1388 }
 0x322   :  { %v261_v32 = vsel %vm221_vm8, %v1389_v31, 0.0 }
 0x323   :  { %262 = vadd.xlane.f32.xlu0 %v261_v32  ;;  %v1314_v32 = vld [vmem:[#allocation7 + $0x20] sm:$0xff] }
 0x324   :  { %v319_v33 = vpop.xlane.xlu2 %318 }
 0x325   :  { %v323_v34 = vsub.f32 %v315_v17, %v319_v33 }
 0x327   :  { %v325_v35 = vmul.f32 1.442695, %v323_v34 }
 0x329   :  { %1390 = vpow2.f32 %v325_v35 }
 0x32c   :  { %v322_v36 = vpop.xlane.xlu2 %321 }
 0x32d   :  { %v324_v37 = vsub.f32 %v316_v21, %v322_v36 }
 0x32f   :  { %v1391_v38 = vpop.eup %1390  ;;  %v327_v39 = vmul.f32 1.442695, %v324_v37 }
 0x330   :  { %v329_v40 = vsel %vm221_vm8, %v1391_v38, 0.0 }
 0x331   :  { %1392 = vpow2.f32 %v327_v39  ;;  %330 = vadd.xlane.f32.xlu1 %v329_v40 }
 0x333   :  { %269 = vrot.lane.b32.xlu2 %v1659_v59, %s1587_s7 }
 0x337   :  { %v1393_v41 = vpop.eup %1392 }
 0x338   :  { %v332_v42 = vsel %vm221_vm8, %v1393_v41, 0.0 }
 0x339   :  { %333 = vadd.xlane.f32.xlu0 %v332_v42 }
 0x34d   :  { %340 = vrot.lane.b32.xlu0 %v1659_v59, %s1594_s12 }
 0x38e   :  { %v260_v43 = vpop.xlane.xlu2 %259 }
 0x38f   :  { %1394 = vrcp.f32 %v260_v43 }
 0x395   :  { %v1395_v46 = vpop.eup %1394 }
 0x396   :  { %v270_v44 = vpop.permute.xlu2 %269  ;;  %v263_v45 = vpop.xlane.xlu0 %262  ;;  %v266_v48 = vmul.f32 %v1395_v46, %v1387_v28 }
 0x397   :  { %1396 = vrcp.f32 %v263_v45  ;;  %282 = vmatpush.bf16.msra.mxu2 %v270_v44 }
 0x39d   :  { %v1397_v47 = vpop.eup %1396 }
 0x39e   :  { %v267_v51 = vmul.f32 %v1397_v47, %v1389_v31 }
 0x3a0   :  { %v268_v52 = vpack.c.bf16 %v267_v51, %v266_v48 }
 0x3a2   :  { %1204 = vmatmul.msk.bf16.vlgmr.msra.gmra.mxu2 %vm221_vm8, %v268_v52 }
 0x3a4   :  { %v331_v54 = vpop.xlane.xlu1 %330 }
 0x3ac   :  { %v334_v53 = vpop.xlane.xlu0 %333 }
 0x3ad   :  { %1398 = vrcp.f32 %v334_v53  ;;  %v1364_v53 = vld [vmem:[#allocation8 + $0x2] ss:$0 sm:$0xff] }
 0x3ae   :  { %1400 = vrcp.f32 %v331_v54 }
 0x3b3   :  { %v1399_v55 = vpop.eup %1398 }
 0x3b4   :  { %v1401_v56 = vpop.eup %1400  ;;  %v338_v57 = vmul.f32 %v1399_v55, %v1393_v41 }
 0x3b5   :  { %v337_v58 = vmul.f32 %v1401_v56, %v1391_v38 }
 0x3b7   :  { %v339_v60 = vpack.c.bf16 %v338_v57, %v337_v58  ;;  %v1365_v58 = vld [vmem:[#allocation8 + $0x3] ss:$0 sm:$0xff] }
 0x3bf   :  { %v341_v59 = vpop.permute.xlu0 %340 }
 0x3c0   :  { %353 = vmatpush.bf16.msrb.mxu2 %v341_v59 }
 0x3c3   :  { %1206 = vmatmul.msk.bf16.vlgmr.msrb.gmra.mxu2 %vm221_vm8, %v339_v60 }
 0x425   :  { %v284_v62 = vpop.f32.mrf.mxu2 }
 0x42d   :  { %v286_v63 = vpop.f32.mrf.mxu2 }
 0x446   :  { %v355_v0 = vpop.f32.mrf.mxu2 }
 0x44e   :  { %v357_v1 = vpop.f32.mrf.mxu2 }
 0x44f   :  { %v1350_v2 = vpack.i.bf16 %v357_v1, %v355_v0  ;;  %v1318_v0 = vld [vmem:[#allocation7 + $0x40] sm:$0xff]  ;;  %v1317_v1 = vld [vmem:[#allocation7 + $0x38] sm:$0xff] }
 0x451   :  { %1351 = vrot.lane.b32.xlu2 %v1350_v2, %s1595_s13  ;;  %v1316_v2 = vld [vmem:[#allocation7 + $0x30] sm:$0xff] }
 0x4ab   :  { %v1352_v5 = vpop.permute.xlu2 %1351 }
 0x4ac   :  { %v1354_v6 = vunpack.i.h.bf16 %v1352_v5  ;;  %v1353_v7 = vunpack.i.l.bf16 %v1352_v5 }
 0x4ae   :  { %v369_v8 = vsel %vm221_vm8, %v286_v63, %v1354_v6  ;;  %v368_v9 = vsel %vm221_vm8, %v284_v62, %v1353_v7  ;;  %v1319_v63 = vld [vmem:[#allocation7 + $0x48] sm:$0xff] }
 0x4af   :  { %v374_v12 = vpack.c.bf16 %v369_v8, %v368_v9  ;;  %557 = vmatpush.bf16.msrb.mxu3 %v1319_v63 }
 0x4b1   :  { %1215 = vmatmul.msk.bf16.vlgmr.msrb.gmra.mxu0 %vm123_vm0, %v374_v12 }
 0x4b3   :  { %558 = vmatpush.bf16.msrb.mxu3 %v1318_v0 }
 0x4b7   :  { %559 = vmatpush.bf16.msrb.mxu3 %v1317_v1 }
 0x4bb   :  { %560 = vmatpush.bf16.msrb.mxu3 %v1316_v2 }
 0x52e   :  { %v401_v14 = vpop.f32.mrf.mxu0 }
 0x52f   :  { %v402_v15 = vadd.f32 %v1363_v13, %v401_v14 }
 0x531   :  { %v406_v16 = vadd.f32 %v402_v15, %v1652_v49 }
 0x533   :  { %v410_v17 = vsel %vm123_vm0, %v406_v16, 0.0 }
 0x534   :  { %411 = vadd.xlane.f32.xlu2 %v410_v17 }
 0x536   :  { %v403_v18 = vpop.f32.mrf.mxu0 }
 0x537   :  { %v404_v19 = vadd.f32 %v1363_v13, %v403_v18 }
 0x539   :  { %v407_v20 = vadd.f32 %v404_v19, %v1654_v50  ;;  %v1315_v50 = vld [vmem:[#allocation7 + $0x28] sm:$0xff] }
 0x53a   :  { %488 = vmatpush.bf16.msrb.mxu1 %v1315_v50 }
 0x53b   :  { %v413_v21 = vsel %vm123_vm0, %v407_v20, 0.0 }
 0x53c   :  { %414 = vadd.xlane.f32.xlu0 %v413_v21 }
 0x53e   :  { %489 = vmatpush.bf16.msrb.mxu1 %v1314_v32 }
 0x5a7   :  { %v412_v22 = vpop.xlane.xlu2 %411 }
 0x5a8   :  { %v416_v23 = vmul.f32 %v412_v22, %v1644_v10 }
 0x5aa   :  { %v418_v24 = vsub.f32 %v406_v16, %v416_v23 }
 0x5ac   :  { %v420_v25 = vmul.f32 %v418_v24, %v418_v24 }
 0x5ae   :  { %v422_v26 = vsel %vm123_vm0, %v420_v25, 0.0 }
 0x5af   :  { %v415_v27 = vpop.xlane.xlu0 %414  ;;  %423 = vadd.xlane.f32.xlu2 %v422_v26 }
 0x5b0   :  { %v417_v49 = vmul.f32 %v415_v27, %v1644_v10 }
 0x5b2   :  { %v419_v28 = vsub.f32 %v407_v20, %v417_v49 }
 0x5b4   :  { %v421_v29 = vmul.f32 %v419_v28, %v419_v28 }
 0x5b6   :  { %v425_v30 = vsel %vm123_vm0, %v421_v29, 0.0  ;;  %v1367_v29 = vld [vmem:[#allocation8 + $0x5] ss:$0 sm:$0xff] }
 0x5b7   :  { %426 = vadd.xlane.f32.xlu0 %v425_v30 }
 0x622   :  { %v424_v31 = vpop.xlane.xlu2 %423 }
 0x623   :  { %v428_v33 = vmul.f32 %v424_v31, %v1644_v10 }
 0x625   :  { %v430_v34 = vadd.f32 1e-12, %v428_v33 }
 0x627   :  { %1402 = vrsqrt.f32 %v430_v34  ;;  %vm438_vm12 = vweird.f32 %v430_v34 }
 0x62a   :  { %v427_v35 = vpop.xlane.xlu0 %426 }
 0x62b   :  { %v429_v36 = vmul.f32 %v427_v35, %v1644_v10 }
 0x62d   :  { %v1403_v37 = vpop.eup %1402  ;;  %v431_v38 = vadd.f32 1e-12, %v429_v36 }
 0x62e   :  { %v433_v39 = vmul.f32 %v1403_v37, %v430_v34  ;;  %vm439_vm11 = vweird.f32 %v1403_v37 }
 0x62f   :  { %1404 = vrsqrt.f32 %v431_v38  ;;  %vm440_vm13 = vmor %vm438_vm12, %vm439_vm11  ;;  %vm448_vm15 = vweird.f32 %v431_v38 }
 0x630   :  { %v434_v40 = vmul.f32 %v1403_v37, %v433_v39 }
 0x632   :  { %v435_v41 = vmul.f32 0.5, %v434_v40 }
 0x634   :  { %v436_v42 = vsub.f32 1.5, %v435_v41 }
 0x635   :  { %v1405_v43 = vpop.eup %1404 }
 0x636   :  { %v437_v44 = vmul.f32 %v1403_v37, %v436_v42  ;;  %v443_v45 = vmul.f32 %v1405_v43, %v431_v38  ;;  %vm449_vm14 = vweird.f32 %v1405_v43 }
 0x637   :  { %vm450_vm1 = vmor %vm448_vm15, %vm449_vm14 }
 0x638   :  { %v444_v46 = vmul.f32 %v1405_v43, %v443_v45  ;;  %v441_v47 = vsel %vm440_vm13, %v1403_v37, %v437_v44 }
 0x639   :  { %v452_v52 = vmul.f32 %v441_v47, %v418_v24  ;;  %v1321_v47 = vld [vmem:[#allocation7 + $0x58] sm:$0xff] }
 0x63a   :  { %v445_v48 = vmul.f32 0.5, %v444_v46  ;;  %649 = vmatpush.bf16.msra.mxu2 %v1321_v47 }
 0x63b   :  { %v455_v57 = vmul.f32 %v1364_v53, %v452_v52  ;;  %v1320_v52 = vld [vmem:[#allocation7 + $0x50] sm:$0xff] }
 0x63c   :  { %v446_v51 = vsub.f32 1.5, %v445_v48 }
 0x63d   :  { %v458_v60 = vadd.f32 %v1365_v58, %v455_v57 }
 0x63e   :  { %v447_v54 = vmul.f32 %v1405_v43, %v446_v51  ;;  %650 = vmatpush.bf16.msra.mxu2 %v1320_v52 }
 0x640   :  { %v451_v55 = vsel %vm450_vm1, %v1405_v43, %v447_v54 }
 0x641   :  { %v453_v56 = vmul.f32 %v451_v55, %v419_v28 }
 0x643   :  { %v456_v59 = vmul.f32 %v1364_v53, %v453_v56 }
 0x645   :  { %v459_v61 = vadd.f32 %v1365_v58, %v456_v59 }
 0x647   :  { %v464_v62 = vpack.c.bf16 %v459_v61, %v458_v60 }
 0x649   :  { %1224 = vmatmul.msk.bf16.vlgmr.msrb.gmra.mxu1 %vm123_vm0, %v464_v62 }
 0x6c6   :  { %v491_v5 = vpop.f32.mrf.mxu1 }
 0x6c7   :  { %v492_v6 = vadd.f32 %v1366_v3, %v491_v5 }
 0x6c9   :  { %v498_v7 = vmul.f32 0.044715, %v492_v6  ;;  %v496_v24 = vmul.f32 0.5, %v492_v6 }
 0x6cb   :  { %v500_v8 = vmul.f32 %v498_v7, %v492_v6 }
 0x6cd   :  { %v502_v9 = vmul.f32 %v500_v8, %v492_v6 }
 0x6ce   :  { %v493_v12 = vpop.f32.mrf.mxu1 }
 0x6cf   :  { %v504_v13 = vadd.f32 %v502_v9, %v492_v6  ;;  %v494_v14 = vadd.f32 %v1366_v3, %v493_v12  ;;  %v1368_v6 = vld [vmem:[#allocation8 + $0x6] ss:$0 sm:$0xff]  ;;  %v1369_v12 = vld [vmem:[#allocation8 + $0x7] ss:$0 sm:$0xff] }
 0x6d1   :  { %v499_v15 = vmul.f32 0.044715, %v494_v14  ;;  %v506_v16 = vmul.f32 0.7978846, %v504_v13  ;;  %v497_v25 = vmul.f32 0.5, %v494_v14 }
 0x6d3   :  { %v501_v17 = vmul.f32 %v499_v15, %v494_v14  ;;  %1406 = vtanh.f32 %v506_v16 }
 0x6d5   :  { %v503_v18 = vmul.f32 %v501_v17, %v494_v14 }
 0x6d7   :  { %v505_v19 = vadd.f32 %v503_v18, %v494_v14 }
 0x6d9   :  { %v507_v20 = vmul.f32 0.7978846, %v505_v19  ;;  %v1407_v21 = vpop.eup %1406 }
 0x6da   :  { %v510_v22 = vadd.f32 1.0, %v1407_v21 }
 0x6db   :  { %1408 = vtanh.f32 %v507_v20  ;;  %v1370_v20 = vld [vmem:[#allocation8 + $0x8] ss:$0 sm:$0xff] }
 0x6dc   :  { %v512_v27 = vmul.f32 %v510_v22, %v496_v24 }
 0x6e1   :  { %v1409_v23 = vpop.eup %1408 }
 0x6e2   :  { %v511_v26 = vadd.f32 1.0, %v1409_v23 }
 0x6e4   :  { %v513_v49 = vmul.f32 %v511_v26, %v497_v25 }
 0x6e6   :  { %v522_v28 = vpack.c.bf16 %v513_v49, %v512_v27 }
 0x6e8   :  { %1241 = vmatmul.msk.bf16.vlgmr.msrb.gmra.mxu3 %vm549_vm2, %v522_v28 }
 0x76b   :  { %v562_v30 = vpop.f32.mrf.mxu3 }
 0x76c   :  { %v563_v50 = vadd.f32 %v1367_v29, %v562_v30 }
 0x76e   :  { %v567_v31 = vadd.f32 %v563_v50, %v458_v60 }
 0x770   :  { %v571_v32 = vsel %vm123_vm0, %v567_v31, 0.0 }
 0x771   :  { %572 = vadd.xlane.f32.xlu2 %v571_v32 }
 0x773   :  { %v564_v33 = vpop.f32.mrf.mxu3 }
 0x774   :  { %v565_v34 = vadd.f32 %v1367_v29, %v564_v33 }
 0x776   :  { %v568_v35 = vadd.f32 %v565_v34, %v459_v61 }
 0x778   :  { %v574_v36 = vsel %vm123_vm0, %v568_v35, 0.0 }
 0x779   :  { %575 = vadd.xlane.f32.xlu0 %v574_v36 }
 0x7e4   :  { %v573_v37 = vpop.xlane.xlu2 %572 }
 0x7e5   :  { %v577_v38 = vmul.f32 %v573_v37, %v1644_v10 }
 0x7e7   :  { %v579_v39 = vsub.f32 %v567_v31, %v577_v38 }
 0x7e9   :  { %v581_v40 = vmul.f32 %v579_v39, %v579_v39 }
 0x7eb   :  { %v583_v41 = vsel %vm123_vm0, %v581_v40, 0.0 }
 0x7ec   :  { %v576_v42 = vpop.xlane.xlu0 %575  ;;  %584 = vadd.xlane.f32.xlu2 %v583_v41 }
 0x7ed   :  { %v578_v43 = vmul.f32 %v576_v42, %v1644_v10 }
 0x7ef   :  { %v580_v44 = vsub.f32 %v568_v35, %v578_v43 }
 0x7f1   :  { %v582_v45 = vmul.f32 %v580_v44, %v580_v44 }
 0x7f3   :  { %v586_v46 = vsel %vm123_vm0, %v582_v45, 0.0 }
 0x7f4   :  { %587 = vadd.xlane.f32.xlu0 %v586_v46 }
 0x85f   :  { %v585_v48 = vpop.xlane.xlu2 %584 }
 0x860   :  { %v589_v51 = vmul.f32 %v585_v48, %v1644_v10 }
 0x862   :  { %v591_v53 = vadd.f32 1e-12, %v589_v51 }
 0x864   :  { %1410 = vrsqrt.f32 %v591_v53  ;;  %vm599_vm4 = vweird.f32 %v591_v53 }
 0x867   :  { %v588_v54 = vpop.xlane.xlu0 %587 }
 0x868   :  { %v590_v55 = vmul.f32 %v588_v54, %v1644_v10 }
 0x86a   :  { %v1411_v56 = vpop.eup %1410  ;;  %v592_v57 = vadd.f32 1e-12, %v590_v55 }
 0x86b   :  { %v594_v58 = vmul.f32 %v1411_v56, %v591_v53  ;;  %vm600_vm3 = vweird.f32 %v1411_v56 }
 0x86c   :  { %1412 = vrsqrt.f32 %v592_v57  ;;  %vm601_vm5 = vmor %vm599_vm4, %vm600_vm3  ;;  %vm609_vm7 = vweird.f32 %v592_v57 }
 0x86d   :  { %v595_v59 = vmul.f32 %v1411_v56, %v594_v58 }
 0x86f   :  { %v596_v60 = vmul.f32 0.5, %v595_v59 }
 0x871   :  { %v597_v61 = vsub.f32 1.5, %v596_v60 }
 0x872   :  { %v1413_v62 = vpop.eup %1412 }
 0x873   :  { %v598_v63 = vmul.f32 %v1411_v56, %v597_v61  ;;  %v604_v0 = vmul.f32 %v1413_v62, %v592_v57  ;;  %vm610_vm6 = vweird.f32 %v1413_v62 }
 0x874   :  { %vm611_vm9 = vmor %vm609_vm7, %vm610_vm6 }
 0x875   :  { %v605_v1 = vmul.f32 %v1413_v62, %v604_v0  ;;  %v602_v2 = vsel %vm601_vm5, %v1411_v56, %v598_v63 }
 0x876   :  { %v613_v7 = vmul.f32 %v602_v2, %v579_v39 }
 0x877   :  { %v606_v3 = vmul.f32 0.5, %v605_v1 }
 0x878   :  { %v616_v13 = vmul.f32 %v1368_v6, %v613_v7 }
 0x879   :  { %v607_v5 = vsub.f32 1.5, %v606_v3 }
 0x87a   :  { %v1718_v16 = vadd.f32 %v1369_v12, %v616_v13 }
 0x87b   :  { %v608_v8 = vmul.f32 %v1413_v62, %v607_v5 }
 0x87d   :  { %v612_v9 = vsel %vm611_vm9, %v1413_v62, %v608_v8 }
 0x87e   :  { %v614_v14 = vmul.f32 %v612_v9, %v580_v44 }
 0x880   :  { %v617_v15 = vmul.f32 %v1368_v6, %v614_v14 }
 0x882   :  { %v1720_v17 = vadd.f32 %v1369_v12, %v617_v15 }
 0x884   :  { %v621_v18 = vpack.c.bf16 %v1720_v17, %v1718_v16 }
 0x886   :  { %1250 = vmatmul.msk.bf16.vlgmr.msra.gmra.mxu2 %vm123_vm0, %v621_v18 }
 0x909   :  { %v652_v19 = vpop.f32.mrf.mxu2 }
 0x90a   :  { %v653_v22 = vadd.f32 %v1370_v20, %v652_v19 }
 0x911   :  { %v654_v21 = vpop.f32.mrf.mxu2 }
 0x912   :  { %v655_v23 = vadd.f32 %v1370_v20, %v654_v21  ;;  %v1323_v21 = vld [vmem:[#allocation7 + $0x68] sm:$0xff] }
 0x914   :  { %v1725_v24 = vpack.c.bf16 %v655_v23, %v653_v22 }
 0x916   :  { %659 = vrot.lane.b32.xlu0 %v1725_v24, %s1592_s3  ;;  %728 = vrot.lane.b32.xlu2 %v1725_v24, %s1591_s2 }
 0x917   :  { %730 = vrot.lane.b32.xlu1 %v1725_v24, %s1593_s11 }
 0x970   :  { %v729_v28 = vpop.permute.xlu2 %728 }
 0x988   :  { %v660_v25 = vpop.permute.xlu0 %659 }
 0x989   :  { %v665_v26 = vsel %vm221_vm8, %v660_v25, 0  ;;  %v731_v27 = vpop.permute.xlu1 %730  ;;  %v1322_v25 = vld [vmem:[#allocation7 + $0x60] sm:$0xff] }
 0x98a   :  { %v736_v49 = vsel %vm221_vm8, %v731_v27, 0  ;;  %674 = vmatpush.bf16.xpose.msra.mxu0 %v665_v26 }
 0x98b   :  { %745 = vmatpush.bf16.xpose.msra.mxu3 %v736_v49 }
 0x991   :  { %1251 = vmatmul.msk.bf16.vlgmr.msra.gmra.mxu0 %vm221_vm8, %v1725_v24 }
 0x992   :  { %1253 = vmatmul.msk.bf16.vlgmr.msra.gmra.mxu3 %vm221_vm8, %v729_v28  ;;  %837 = vmatpush.bf16.msrb.mxu0 %v1323_v21  ;;  %v1329_v21 = vld [vmem:[#allocation7 + $0x98] sm:$0xff] }
 0x993   :  { %995 = vmatpush.bf16.msrb.mxu3 %v1329_v21 }
 0x996   :  { %838 = vmatpush.bf16.msrb.mxu0 %v1322_v25  ;;  %v1374_v25 = vld [vmem:[#allocation8 + $0xc] ss:$0 sm:$0xff] }
 0xa0e   :  { %v676_v29 = vpop.f32.mrf.mxu0 }
 0xa0f   :  { %v681_v30 = vmul.f32 0.25, %v676_v29 }
 0xa11   :  { %v683_v50 = vadd.f32 %v681_v30, %v1672_v4 }
 0xa13   :  { %v685_v31 = vsel %vm221_vm8, %v683_v50, -inf }
 0xa14   :  { %686 = vmax.xlane.f32.xlu1 %v685_v31 }
 0xa15   :  { %v747_v32 = vpop.f32.mrf.mxu3 }
 0xa16   :  { %v752_v33 = vmul.f32 0.25, %v747_v32  ;;  %v678_v34 = vpop.f32.mrf.mxu0  ;;  %v1371_v32 = vld [vmem:[#allocation8 + $0x9] ss:$0 sm:$0xff] }
 0xa17   :  { %v682_v36 = vmul.f32 0.25, %v678_v34 }
 0xa18   :  { %v754_v35 = vadd.f32 %v752_v33, %v1672_v4 }
 0xa19   :  { %v684_v40 = vadd.f32 %v682_v36, %v1676_v11 }
 0xa1a   :  { %v756_v37 = vsel %vm221_vm8, %v754_v35, -inf }
 0xa1b   :  { %757 = vmax.xlane.f32.xlu0 %v756_v37  ;;  %v688_v42 = vsel %vm221_vm8, %v684_v40, -inf }
 0xa1d   :  { %v749_v38 = vpop.f32.mrf.mxu3 }
 0xa1e   :  { %v753_v39 = vmul.f32 0.25, %v749_v38 }
 0xa20   :  { %v755_v41 = vadd.f32 %v753_v39, %v1676_v11 }
 0xa22   :  { %v759_v43 = vsel %vm221_vm8, %v755_v41, -inf }
 0xa23   :  { %689 = vmax.xlane.f32.xlu0 %v688_v42  ;;  %760 = vmax.xlane.f32.xlu2 %v759_v43 }
 0xa37   :  { %779 = vrot.lane.b32.xlu0 %v1725_v24, %s1594_s12 }
 0xa87   :  { %v687_v4 = vpop.xlane.xlu1 %686 }
 0xa88   :  { %v691_v46 = vsub.f32 %v683_v50, %v687_v4 }
 0xa8a   :  { %v693_v48 = vmul.f32 1.442695, %v691_v46 }
 0xa8e   :  { %v758_v44 = vpop.xlane.xlu0 %757 }
 0xa8f   :  { %v762_v45 = vsub.f32 %v754_v35, %v758_v44 }
 0xa91   :  { %v764_v47 = vmul.f32 1.442695, %v762_v45 }
 0xa93   :  { %1414 = vpow2.f32 %v764_v47 }
 0xa94   :  { %1416 = vpow2.f32 %v693_v48 }
 0xa96   :  { %v761_v51 = vpop.xlane.xlu2 %760  ;;  %v690_v52 = vpop.xlane.xlu0 %689 }
 0xa97   :  { %v763_v53 = vsub.f32 %v755_v41, %v761_v51  ;;  %v692_v55 = vsub.f32 %v684_v40, %v690_v52 }
 0xa99   :  { %v1415_v11 = vpop.eup %1414  ;;  %v766_v54 = vmul.f32 1.442695, %v763_v53  ;;  %v695_v57 = vmul.f32 1.442695, %v692_v55  ;;  %v1324_v53 = vld [vmem:[#allocation7 + $0x70] sm:$0xff] }
 0xa9a   :  { %v768_v56 = vsel %vm221_vm8, %v1415_v11, 0.0  ;;  %v1417_v58 = vpop.eup %1416 }
 0xa9b   :  { %769 = vadd.xlane.f32.xlu2 %v768_v56  ;;  %1418 = vpow2.f32 %v766_v54  ;;  %v697_v60 = vsel %vm221_vm8, %v1417_v58, 0.0 }
 0xa9c   :  { %1420 = vpow2.f32 %v695_v57 }
 0xaa1   :  { %v1419_v59 = vpop.eup %1418 }
 0xaa2   :  { %v771_v61 = vsel %vm221_vm8, %v1419_v59, 0.0  ;;  %v1421_v62 = vpop.eup %1420 }
 0xaa3   :  { %698 = vadd.xlane.f32.xlu2 %v697_v60  ;;  %772 = vadd.xlane.f32.xlu1 %v771_v61  ;;  %v700_v0 = vsel %vm221_vm8, %v1421_v62, 0.0 }
 0xaa9   :  { %v780_v63 = vpop.permute.xlu0 %779 }
 0xaaa   :  { %792 = vmatpush.bf16.msrb.mxu2 %v780_v63 }
 0xaab   :  { %701 = vadd.xlane.f32.xlu1 %v700_v0 }
 0xabb   :  { %708 = vrot.lane.b32.xlu2 %v1725_v24, %s1587_s7 }
 0xb0e   :  { %v770_v1 = vpop.xlane.xlu2 %769 }
 0xb0f   :  { %1422 = vrcp.f32 %v770_v1 }
 0xb15   :  { %v1423_v5 = vpop.eup %1422 }
 0xb16   :  { %v699_v2 = vpop.xlane.xlu2 %698  ;;  %v773_v3 = vpop.xlane.xlu1 %772  ;;  %v776_v8 = vmul.f32 %v1423_v5, %v1415_v11 }
 0xb17   :  { %1424 = vrcp.f32 %v773_v3 }
 0xb18   :  { %1426 = vrcp.f32 %v699_v2 }
 0xb1d   :  { %v1425_v6 = vpop.eup %1424 }
 0xb1e   :  { %v709_v7 = vpop.permute.xlu2 %708  ;;  %v777_v9 = vmul.f32 %v1425_v6, %v1419_v59  ;;  %v702_v12 = vpop.xlane.xlu1 %701  ;;  %v1372_v6 = vld [vmem:[#allocation8 + $0xa] ss:$0 sm:$0xff] }
 0xb1f   :  { %721 = vmatpush.bf16.msra.mxu1 %v709_v7  ;;  %1428 = vrcp.f32 %v702_v12  ;;  %v1427_v14 = vpop.eup %1426  ;;  %v1373_v12 = vld [vmem:[#allocation8 + $0xb] ss:$0 sm:$0xff] }
 0xb20   :  { %v778_v13 = vpack.c.bf16 %v777_v9, %v776_v8  ;;  %v705_v18 = vmul.f32 %v1427_v14, %v1417_v58 }
 0xb22   :  { %1254 = vmatmul.msk.bf16.vlgmr.msrb.gmra.mxu2 %vm221_vm8, %v778_v13 }
 0xb25   :  { %v1429_v15 = vpop.eup %1428 }
 0xb26   :  { %v706_v19 = vmul.f32 %v1429_v15, %v1421_v62 }
 0xb28   :  { %v707_v20 = vpack.c.bf16 %v706_v19, %v705_v18 }
 0xb2a   :  { %1252 = vmatmul.msk.bf16.vlgmr.msra.gmra.mxu1 %vm221_vm8, %v707_v20 }
 0xba5   :  { %v794_v22 = vpop.f32.mrf.mxu2 }
 0xba7   :  { %v723_v26 = vpop.f32.mrf.mxu1 }
 0xbad   :  { %v796_v23 = vpop.f32.mrf.mxu2 }
 0xbae   :  { %v1355_v24 = vpack.i.bf16 %v796_v23, %v794_v22  ;;  %v1328_v22 = vld [vmem:[#allocation7 + $0x90] sm:$0xff]  ;;  %v1327_v23 = vld [vmem:[#allocation7 + $0x88] sm:$0xff] }
 0xbaf   :  { %v725_v29 = vpop.f32.mrf.mxu1  ;;  %996 = vmatpush.bf16.msrb.mxu3 %v1328_v22 }
 0xbb0   :  { %1356 = vrot.lane.b32.xlu1 %v1355_v24, %s1595_s13  ;;  %v1326_v24 = vld [vmem:[#allocation7 + $0x80] sm:$0xff] }
 0xbb3   :  { %997 = vmatpush.bf16.msrb.mxu3 %v1327_v23 }
 0xbb7   :  { %998 = vmatpush.bf16.msrb.mxu3 %v1326_v24 }
 0xc22   :  { %v1357_v27 = vpop.permute.xlu1 %1356 }
 0xc23   :  { %v1359_v49 = vunpack.i.h.bf16 %v1357_v27  ;;  %v1358_v28 = vunpack.i.l.bf16 %v1357_v27 }
 0xc25   :  { %v808_v30 = vsel %vm221_vm8, %v725_v29, %v1359_v49  ;;  %v807_v50 = vsel %vm221_vm8, %v723_v26, %v1358_v28 }
 0xc26   :  { %v813_v31 = vpack.c.bf16 %v808_v30, %v807_v50 }
 0xc28   :  { %1263 = vmatmul.msk.bf16.vlgmr.msrb.gmra.mxu0 %vm123_vm0, %v813_v31 }
 0xca5   :  { %v840_v33 = vpop.f32.mrf.mxu0 }
 0xca6   :  { %v841_v34 = vadd.f32 %v1371_v32, %v840_v33 }
 0xca8   :  { %v845_v35 = vadd.f32 %v841_v34, %v1718_v16 }
 0xcaa   :  { %v849_v36 = vsel %vm123_vm0, %v845_v35, 0.0 }
 0xcab   :  { %850 = vadd.xlane.f32.xlu0 %v849_v36 }
 0xcad   :  { %v842_v37 = vpop.f32.mrf.mxu0 }
 0xcae   :  { %v843_v38 = vadd.f32 %v1371_v32, %v842_v37 }
 0xcb0   :  { %v846_v39 = vadd.f32 %v843_v38, %v1720_v17  ;;  %v1325_v17 = vld [vmem:[#allocation7 + $0x78] sm:$0xff] }
 0xcb1   :  { %927 = vmatpush.bf16.msrb.mxu1 %v1325_v17 }
 0xcb2   :  { %v852_v40 = vsel %vm123_vm0, %v846_v39, 0.0 }
 0xcb3   :  { %853 = vadd.xlane.f32.xlu2 %v852_v40 }
 0xcb5   :  { %928 = vmatpush.bf16.msrb.mxu1 %v1324_v53 }
 0xd1e   :  { %v851_v41 = vpop.xlane.xlu0 %850 }
 0xd1f   :  { %v855_v42 = vmul.f32 %v851_v41, %v1644_v10 }
 0xd21   :  { %v857_v43 = vsub.f32 %v845_v35, %v855_v42 }
 0xd23   :  { %v859_v4 = vmul.f32 %v857_v43, %v857_v43 }
 0xd25   :  { %v861_v44 = vsel %vm123_vm0, %v859_v4, 0.0 }
 0xd26   :  { %v854_v45 = vpop.xlane.xlu2 %853  ;;  %862 = vadd.xlane.f32.xlu1 %v861_v44 }
 0xd27   :  { %v856_v16 = vmul.f32 %v854_v45, %v1644_v10 }
 0xd29   :  { %v858_v46 = vsub.f32 %v846_v39, %v856_v16  ;;  %v1375_v16 = vld [vmem:[#allocation8 + $0xd] ss:$0 sm:$0xff] }
 0xd2b   :  { %v860_v47 = vmul.f32 %v858_v46, %v858_v46 }
 0xd2d   :  { %v864_v48 = vsel %vm123_vm0, %v860_v47, 0.0 }
 0xd2e   :  { %865 = vadd.xlane.f32.xlu0 %v864_v48 }
 0xd99   :  { %v863_v51 = vpop.xlane.xlu1 %862 }
 0xd9a   :  { %v867_v52 = vmul.f32 %v863_v51, %v1644_v10 }
 0xd9c   :  { %v869_v11 = vadd.f32 1e-12, %v867_v52 }
 0xd9e   :  { %1430 = vrsqrt.f32 %v869_v11  ;;  %vm877_vm10 = vweird.f32 %v869_v11 }
 0xda1   :  { %v866_v54 = vpop.xlane.xlu0 %865 }
 0xda2   :  { %v868_v55 = vmul.f32 %v866_v54, %v1644_v10 }
 0xda4   :  { %v1431_v56 = vpop.eup %1430  ;;  %v870_v57 = vadd.f32 1e-12, %v868_v55 }
 0xda5   :  { %v872_v58 = vmul.f32 %v1431_v56, %v869_v11  ;;  %vm878_vm8 = vweird.f32 %v1431_v56 }
 0xda6   :  { %1432 = vrsqrt.f32 %v870_v57  ;;  %vm879_vm11 = vmor %vm877_vm10, %vm878_vm8  ;;  %vm887_vm13 = vweird.f32 %v870_v57 }
 0xda7   :  { %v873_v59 = vmul.f32 %v1431_v56, %v872_v58 }
 0xda9   :  { %v874_v60 = vmul.f32 0.5, %v873_v59 }
 0xdab   :  { %v875_v61 = vsub.f32 1.5, %v874_v60 }
 0xdac   :  { %v1433_v62 = vpop.eup %1432 }
 0xdad   :  { %v876_v63 = vmul.f32 %v1431_v56, %v875_v61  ;;  %v882_v0 = vmul.f32 %v1433_v62, %v870_v57  ;;  %vm888_vm12 = vweird.f32 %v1433_v62 }
 0xdae   :  { %vm889_vm14 = vmor %vm887_vm13, %vm888_vm12 }
 0xdaf   :  { %v883_v1 = vmul.f32 %v1433_v62, %v882_v0  ;;  %v880_v2 = vsel %vm879_vm11, %v1431_v56, %v876_v63  ;;  %v1331_v0 = vld [vmem:[#allocation7 + $0xa8] sm:$0xff] }
 0xdb0   :  { %v891_v7 = vmul.f32 %v880_v2, %v857_v43  ;;  %1087 = vmatpush.bf16.msra.mxu2 %v1331_v0 }
 0xdb1   :  { %v884_v3 = vmul.f32 0.5, %v883_v1 }
 0xdb2   :  { %v894_v13 = vmul.f32 %v1372_v6, %v891_v7 }
 0xdb3   :  { %v885_v5 = vsub.f32 1.5, %v884_v3  ;;  %v1330_v3 = vld [vmem:[#allocation7 + $0xa0] sm:$0xff] }
 0xdb4   :  { %v897_v18 = vadd.f32 %v1373_v12, %v894_v13  ;;  %1088 = vmatpush.bf16.msra.mxu2 %v1330_v3 }
 0xdb5   :  { %v886_v8 = vmul.f32 %v1433_v62, %v885_v5 }
 0xdb7   :  { %v890_v9 = vsel %vm889_vm14, %v1433_v62, %v886_v8 }
 0xdb8   :  { %v892_v14 = vmul.f32 %v890_v9, %v858_v46 }
 0xdba   :  { %v895_v15 = vmul.f32 %v1372_v6, %v892_v14 }
 0xdbc   :  { %v898_v19 = vadd.f32 %v1373_v12, %v895_v15 }
 0xdbe   :  { %v903_v20 = vpack.c.bf16 %v898_v19, %v897_v18 }
 0xdc0   :  { %1272 = vmatmul.msk.bf16.vlgmr.msrb.gmra.mxu1 %vm123_vm0, %v903_v20 }
 0xe3d   :  { %v930_v26 = vpop.f32.mrf.mxu1 }
 0xe3e   :  { %v931_v27 = vadd.f32 %v1374_v25, %v930_v26 }
 0xe40   :  { %v937_v49 = vmul.f32 0.044715, %v931_v27  ;;  %v935_v41 = vmul.f32 0.5, %v931_v27 }
 0xe42   :  { %v939_v28 = vmul.f32 %v937_v49, %v931_v27  ;;  %v1377_v49 = vld [vmem:[#allocation8 + $0xf] ss:$0 sm:$0xff] }
 0xe44   :  { %v941_v29 = vmul.f32 %v939_v28, %v931_v27 }
 0xe45   :  { %v932_v30 = vpop.f32.mrf.mxu1 }
 0xe46   :  { %v943_v50 = vadd.f32 %v941_v29, %v931_v27  ;;  %v933_v31 = vadd.f32 %v1374_v25, %v932_v30  ;;  %v1376_v25 = vld [vmem:[#allocation8 + $0xe] ss:$0 sm:$0xff] }
 0xe48   :  { %v938_v32 = vmul.f32 0.044715, %v933_v31  ;;  %v945_v33 = vmul.f32 0.7978846, %v943_v50  ;;  %v936_v42 = vmul.f32 0.5, %v933_v31 }
 0xe4a   :  { %v940_v34 = vmul.f32 %v938_v32, %v933_v31  ;;  %1434 = vtanh.f32 %v945_v33  ;;  %v1333_v33 = vld [vmem:[#allocation7 + $0xb8] sm:$0xff] }
 0xe4b   :  { %1125 = vmatpush.bf16.msra.mxu0 %v1333_v33 }
 0xe4c   :  { %v942_v35 = vmul.f32 %v940_v34, %v933_v31  ;;  %v1332_v34 = vld [vmem:[#allocation7 + $0xb0] sm:$0xff] }
 0xe4e   :  { %v944_v36 = vadd.f32 %v942_v35, %v933_v31 }
 0xe4f   :  { %1126 = vmatpush.bf16.msra.mxu0 %v1332_v34 }
 0xe50   :  { %v946_v37 = vmul.f32 0.7978846, %v944_v36  ;;  %v1435_v38 = vpop.eup %1434  ;;  %v1378_v36 = vld [vmem:[#allocation8 + $0x12] ss:$0 sm:$0xff] }
 0xe51   :  { %v949_v39 = vadd.f32 1.0, %v1435_v38 }
 0xe52   :  { %1436 = vtanh.f32 %v946_v37 }
 0xe53   :  { %v951_v4 = vmul.f32 %v949_v39, %v935_v41 }
 0xe58   :  { %v1437_v40 = vpop.eup %1436 }
 0xe59   :  { %v950_v43 = vadd.f32 1.0, %v1437_v40 }
 0xe5b   :  { %v952_v44 = vmul.f32 %v950_v43, %v936_v42  ;;  %v1379_v43 = vld [vmem:[#allocation8 + $0x13] ss:$0 sm:$0xff] }
 0xe5d   :  { %v961_v45 = vpack.c.bf16 %v952_v44, %v951_v4 }
 0xe5f   :  { %1289 = vmatmul.msk.bf16.vlgmr.msrb.gmra.mxu3 %vm549_vm2, %v961_v45 }
 0xee2   :  { %v1000_v46 = vpop.f32.mrf.mxu3 }
 0xee3   :  { %v1001_v47 = vadd.f32 %v1375_v16, %v1000_v46 }
 0xee5   :  { %v1005_v48 = vadd.f32 %v1001_v47, %v897_v18 }
 0xee7   :  { %v1009_v17 = vsel %vm123_vm0, %v1005_v48, 0.0 }
 0xee8   :  { %1010 = vadd.xlane.f32.xlu0 %v1009_v17 }
 0xeea   :  { %v1002_v51 = vpop.f32.mrf.mxu3 }
 0xeeb   :  { %v1003_v52 = vadd.f32 %v1375_v16, %v1002_v51 }
 0xeed   :  { %v1006_v53 = vadd.f32 %v1003_v52, %v898_v19 }
 0xeef   :  { %v1012_v11 = vsel %vm123_vm0, %v1006_v53, 0.0 }
 0xef0   :  { %1013 = vadd.xlane.f32.xlu2 %v1012_v11 }
 0xf5b   :  { %v1011_v54 = vpop.xlane.xlu0 %1010 }
 0xf5c   :  { %v1015_v55 = vmul.f32 %v1011_v54, %v1644_v10 }
 0xf5e   :  { %v1017_v56 = vsub.f32 %v1005_v48, %v1015_v55 }
 0xf60   :  { %v1019_v57 = vmul.f32 %v1017_v56, %v1017_v56 }
 0xf62   :  { %v1021_v58 = vsel %vm123_vm0, %v1019_v57, 0.0 }
 0xf63   :  { %v1014_v59 = vpop.xlane.xlu2 %1013  ;;  %1022 = vadd.xlane.f32.xlu0 %v1021_v58 }
 0xf64   :  { %v1016_v60 = vmul.f32 %v1014_v59, %v1644_v10 }
 0xf66   :  { %v1018_v61 = vsub.f32 %v1006_v53, %v1016_v60 }
 0xf68   :  { %v1020_v62 = vmul.f32 %v1018_v61, %v1018_v61 }
 0xf6a   :  { %v1024_v63 = vsel %vm123_vm0, %v1020_v62, 0.0 }
 0xf6b   :  { %1025 = vadd.xlane.f32.xlu1 %v1024_v63 }
 0xfd6   :  { %v1023_v1 = vpop.xlane.xlu0 %1022 }
 0xfd7   :  { %v1027_v2 = vmul.f32 %v1023_v1, %v1644_v10 }
 0xfd9   :  { %v1029_v5 = vadd.f32 1e-12, %v1027_v2 }
 0xfdb   :  { %1438 = vrsqrt.f32 %v1029_v5  ;;  %vm1037_vm1 = vweird.f32 %v1029_v5 }
 0xfde   :  { %v1026_v6 = vpop.xlane.xlu1 %1025 }
 0xfdf   :  { %v1028_v7 = vmul.f32 %v1026_v6, %v1644_v10 }
 0xfe1   :  { %v1439_v8 = vpop.eup %1438  ;;  %v1030_v9 = vadd.f32 1e-12, %v1028_v7 }
 0xfe2   :  { %v1032_v12 = vmul.f32 %v1439_v8, %v1029_v5  ;;  %vm1038_vm15 = vweird.f32 %v1439_v8 }
 0xfe3   :  { %1440 = vrsqrt.f32 %v1030_v9  ;;  %vm1039_vm2 = vmor %vm1037_vm1, %vm1038_vm15  ;;  %vm1047_vm4 = vweird.f32 %v1030_v9 }
 0xfe4   :  { %v1033_v13 = vmul.f32 %v1439_v8, %v1032_v12 }
 0xfe6   :  { %v1034_v14 = vmul.f32 0.5, %v1033_v13 }
 0xfe8   :  { %v1035_v15 = vsub.f32 1.5, %v1034_v14 }
 0xfe9   :  { %v1441_v18 = vpop.eup %1440 }
 0xfea   :  { %v1036_v19 = vmul.f32 %v1439_v8, %v1035_v15  ;;  %v1042_v20 = vmul.f32 %v1441_v18, %v1030_v9  ;;  %vm1048_vm3 = vweird.f32 %v1441_v18 }
 0xfeb   :  { %vm1049_vm5 = vmor %vm1047_vm4, %vm1048_vm3 }
 0xfec   :  { %v1043_v21 = vmul.f32 %v1441_v18, %v1042_v20  ;;  %v1040_v22 = vsel %vm1039_vm2, %v1439_v8, %v1036_v19 }
 0xfed   :  { %v1051_v10 = vmul.f32 %v1040_v22, %v1017_v56 }
 0xfee   :  { %v1044_v23 = vmul.f32 0.5, %v1043_v21 }
 0xfef   :  { %v1054_v28 = vmul.f32 %v1376_v25, %v1051_v10 }
 0xff0   :  { %v1045_v24 = vsub.f32 1.5, %v1044_v23 }
 0xff1   :  { %v1057_v50 = vadd.f32 %v1377_v49, %v1054_v28 }
 0xff2   :  { %v1046_v26 = vmul.f32 %v1441_v18, %v1045_v24 }
 0xff4   :  { %v1050_v27 = vsel %vm1049_vm5, %v1441_v18, %v1046_v26 }
 0xff5   :  { %v1052_v29 = vmul.f32 %v1050_v27, %v1018_v61 }
 0xff7   :  { %v1055_v30 = vmul.f32 %v1376_v25, %v1052_v29 }
 0xff9   :  { %v1058_v31 = vadd.f32 %v1377_v49, %v1055_v30 }
 0xffb   :  { %v1063_v32 = vpack.c.bf16 %v1058_v31, %v1057_v50 }
 0xffd   :  { %1298 = vmatmul.msk.bf16.vlgmr.msra.gmra.mxu2 %vm123_vm0, %v1063_v32 }
0x1080   :  { %v1090_v35 = vpop.f32.mrf.mxu2 }
0x1081   :  { %v1091_v37 = vadd.f32 %v1378_v36, %v1090_v35 }
0x1083   :  { %1442 = vtanh.f32 %v1091_v37 }
0x1088   :  { %v1092_v38 = vpop.f32.mrf.mxu2 }
0x1089   :  { %v1093_v39 = vadd.f32 %v1378_v36, %v1092_v38  ;;  %v1443_v40 = vpop.eup %1442 }
0x108b   :  { %1444 = vtanh.f32 %v1093_v39 }
0x1091   :  { %v1445_v41 = vpop.eup %1444 }
0x1092   :  { %v1101_v42 = vpack.c.bf16 %v1445_v41, %v1443_v40 }
0x1094   :  { %1307 = vmatmul.msk.bf16.vlgmr.msra.gmra.mxu0 %vm123_vm0, %v1101_v42 }
0x1111   :  { %v1128_v4 = vpop.f32.mrf.mxu0 }
0x1112   :  { %v1129_v44 = vadd.f32 %v1379_v43, %v1128_v4 }
0x1114   :  { %v1308_v45 = vmul.f32 -1.442695, %v1129_v44 }
0x1116   :  { %1446 = vpow2.f32 %v1308_v45 }
0x1119   :  { %v1130_v16 = vpop.f32.mrf.mxu0 }
0x111a   :  { %v1131_v46 = vadd.f32 %v1379_v43, %v1130_v16 }
0x111c   :  { %v1447_v47 = vpop.eup %1446  ;;  %v1309_v48 = vmul.f32 -1.442695, %v1131_v46 }
0x111d   :  { %v1139_v17 = vadd.f32 1.0, %v1447_v47 }
0x111e   :  { %1448 = vpow2.f32 %v1309_v48 }
0x111f   :  { %1450 = vrcp.f32 %v1139_v17  ;;  %v1152_v55 = vand.u32 2147483648, %v1139_v17  ;;  %v1150_v57 = vand.u32 2147483647, %v1139_v17  ;;  %vm1146_vm6 = vweird.f32 %v1139_v17 }
0x1121   :  { %v1153_v60 = vor.u32 1.1754944e-38, %v1152_v55  ;;  %vm1151_vm9 = vcmp.eq.f32.partialorder %v1150_v57, 8.507059e+37 }
0x1124   :  { %v1449_v51 = vpop.eup %1448 }
0x1125   :  { %v1451_v52 = vpop.eup %1450  ;;  %v1140_v53 = vadd.f32 1.0, %v1449_v51 }
0x1126   :  { %v1142_v11 = vmul.f32 %v1451_v52, %v1139_v17  ;;  %vm1147_vm0 = vweird.f32 %v1451_v52 }
0x1127   :  { %1452 = vrcp.f32 %v1140_v53  ;;  %vm1148_vm7 = vmor %vm1146_vm6, %vm1147_vm0  ;;  %v1167_v1 = vand.u32 2147483648, %v1140_v53  ;;  %v1165_v3 = vand.u32 2147483647, %v1140_v53  ;;  %vm1161_vm10 = vweird.f32 %v1140_v53 }
0x1128   :  { %v1143_v54 = vsub.f32 1.0, %v1142_v11 }
0x1129   :  { %v1168_v6 = vor.u32 1.1754944e-38, %v1167_v1  ;;  %vm1166_vm12 = vcmp.eq.f32.partialorder %v1165_v3, 8.507059e+37 }
0x112a   :  { %v1144_v56 = vmul.f32 %v1451_v52, %v1143_v54 }
0x112c   :  { %v1145_v58 = vadd.f32 %v1451_v52, %v1144_v56 }
0x112d   :  { %v1453_v59 = vpop.eup %1452 }
0x112e   :  { %v1157_v61 = vmul.f32 %v1453_v59, %v1140_v53  ;;  %v1149_v62 = vsel %vm1148_vm7, %v1451_v52, %v1145_v58  ;;  %vm1162_vm8 = vweird.f32 %v1453_v59 }
0x112f   :  { %v1154_v63 = vsel %vm1151_vm9, %v1153_v60, %v1149_v62  ;;  %vm1163_vm11 = vmor %vm1161_vm10, %vm1162_vm8 }
0x1130   :  { %v1158_v0 = vsub.f32 1.0, %v1157_v61  ;;  %1171 = vst [vmem:[#allocation10] sm:$0xff] %v1154_v63 }
0x1132   :  { %v1159_v2 = vmul.f32 %v1453_v59, %v1158_v0 }
0x1134   :  { %v1160_v5 = vadd.f32 %v1453_v59, %v1159_v2 }
0x1136   :  { %v1164_v7 = vsel %vm1163_vm11, %v1453_v59, %v1160_v5 }
0x1137   :  { %v1169_v8 = vsel %vm1166_vm12, %v1168_v6, %v1164_v7 }
0x1138   :  { %1172 = vst [vmem:[#allocation10 + $0x8] sm:$0xff] %v1169_v8 }
0x1139   :  { %1185 = dma.vmem_to_hbm [thread:$0]  %s1178_s15, 256, %s1180_s18, [#allocation4], %s1584_s25, %s1584_s25, %s1585_s26  }
0x113a   :  { %1580 = dma.done.wait [#allocation4], 256  }
0x113b   :  { %1581 = vsyncadd [#allocation4], 4294967040 }
0x113c   :  { %1190 = vsyncpa [#allocation3], 1 }
0x113d   :  { %1191 = vsyncpa [#allocation6], 1 }
0x113e   :  { %1192 = vsyncpa [#allocation9], 1 }
0x113f   :  { %1193 = vsyncpa [#allocation4], 1 }

</bundles_post_ra>
